<compile_context>
chip_gen: v7x
topology: tpu7x:2x2x1
jax: 0.10.0
libtpu: 0.0.40
codegen_flags: <defaults>
</compile_context>

<pallas_src>
from functools import reduce
from operator import mul

import numpy as np
import jax
import jax.numpy as jnp
from jax import lax
from jax.experimental import pallas as pl
from jax.experimental.pallas import tpu as pltpu


NEG_SLOPE = 0.01      # nn.LeakyReLU() default
LANE = 128


def _round_up(x, m):
    return (x + m - 1) // m * m


def _conv_out(n, k=3, s=2, p=1):
    return (n + 2 * p - k) // s + 1


# ----------------------------------------------------------------------------
# One-time weight lowering (at __init__):
#   conv1 -> 3 shift-invariant kh-tap matrices  B1[kh] : (C*W, 16*W1)
#   conv2 -> 3 shift-invariant kh-tap matrices  B2[kh] : (16*W1, 32*W2)
#   fc    -> one fused, lane-padded matrix      Wf     : (H2*N2C, NPAD)
# The kw taps, stride-2 width downsampling, width zero-padding, the PyTorch
# NCHW flatten order and the head fusion are all baked into these matrices.
# ----------------------------------------------------------------------------
def _conv1_tap_mats(w1, b1, C, H, W, W1, N1C):
    O = w1.shape[0]
    B1 = np.zeros((3, C * W, N1C), np.float32)
    c_idx = np.arange(C) * W
    for i in range(3):                       # kh tap
        for o in range(O):
            for ow in range(W1):
                col = o * W1 + ow
                for kw in range(3):
                    w = 2 * ow + kw - 1
                    if 0 <= w < W:
                        B1[i, c_idx + w, col] = w1[o, :, i, kw]
    b1row = np.zeros((1, N1C), np.float32)
    for o in range(O):
        b1row[0, o * W1:(o + 1) * W1] = b1[o]
    return B1, b1row


def _conv2_tap_mats(w2, b2, CI, W1, W2, N1C, N2C):
    CO = w2.shape[0]
    B2 = np.zeros((3, N1C, N2C), np.float32)
    ci_idx = np.arange(CI) * W1
    for j in range(3):                       # kh tap
        for co in range(CO):
            for ow2 in range(W2):
                col = co * W2 + ow2
                for kw in range(3):
                    ow1 = 2 * ow2 + kw - 1
                    if 0 <= ow1 < W1:
                        B2[j, ci_idx + ow1, col] = w2[co, :, j, kw]
    b2row = np.zeros((1, N2C), np.float32)
    for co in range(CO):
        b2row[0, co * W2:(co + 1) * W2] = b2[co]
    return B2, b2row


def _fc_mat(fc_ws, fc_bs, CO, H2, W2, N2C, NPAD, code):
    Wf = np.zeros((H2 * N2C, NPAD), np.float32)
    bf = np.zeros((1, NPAD), np.float32)
    for hd, (wt, bs) in enumerate(zip(fc_ws, fc_bs)):
        # wt: (code, CO*H2*W2), PyTorch `h.view(B, -1)` flatten of (CO, H2, W2)
        w4 = np.asarray(wt, np.float32).reshape(code, CO, H2, W2)
        for oh in range(H2):
            for co in range(CO):
                r0 = oh * N2C + co * W2
                Wf[r0:r0 + W2, hd * code:(hd + 1) * code] = w4[:, co, oh, :].T
        bf[0, hd * code:(hd + 1) * code] = np.asarray(bs, np.float32)
    return Wf, bf


# ----------------------------------------------------------------------------
# Fused Pallas kernel + pallas_call builder (one jitted callable per tile size)
# ----------------------------------------------------------------------------
def _build_forward(dims, tile_b, buffered_weights):
    C, H, W = dims["C"], dims["H"], dims["W"]
    H1, H2 = dims["H1"], dims["H2"]
    n_even = dims["n_even"]
    CW, N1C, N2C, NPAD = dims["CW"], dims["N1C"], dims["N2C"], dims["NPAD"]

    # valid kh taps per conv2 output row (drops the zero-padded boundary rows)
    taps2 = [[j for j in range(3) if 0 <= 2 * r + j - 1 < H1] for r in range(H2)]

    def kernel(x_ref, b1m_ref, b1v_ref, b2m_ref, b2v_ref, wf_ref, bfv_ref, o_ref):
        # x_ref: (planes, tile_b, C*W) f32; rows [0:n_even) are the even padded
        # rows (p = 2k), rows [n_even:) the odd ones (p = 2k+1).
        # ---- conv1: three shift-invariant kh-tap GEMMs over (out_row, batch) ----
        def tap1(v, i):
            a = v.reshape(H1 * tile_b, CW).astype(jnp.bfloat16)   # in-kernel cast
            return jnp.dot(a, b1m_ref[i], preferred_element_type=jnp.float32)

        h1 = (tap1(x_ref[0:H1], 0)                       # p = 2*oh      (kh = 0)
              + tap1(x_ref[n_even:n_even + H1], 1)       # p = 2*oh + 1  (kh = 1)
              + tap1(x_ref[1:H1 + 1], 2)                 # p = 2*oh + 2  (kh = 2)
              ) + b1v_ref[...]
        h1 = jnp.where(h1 >= 0.0, h1, NEG_SLOPE * h1).astype(jnp.bfloat16)
        # h1: (H1*tile_b, N1C), rows ordered (out_row, batch) so conv2 row
        # bands are contiguous sublane-aligned slabs.

        # ---- conv2 (banded kh taps per output row) fused with the FC heads ----
        b2t = [b2m_ref[j] for j in range(3)]
        y = None
        for r2 in range(H2):
            s = None
            for j in taps2[r2]:
                r1 = 2 * r2 + j - 1
                d = jnp.dot(h1[r1 * tile_b:(r1 + 1) * tile_b, :], b2t[j],
                            preferred_element_type=jnp.float32)
                s = d if s is None else s + d
            s = s + b2v_ref[...]
            s = jnp.where(s >= 0.0, s, NEG_SLOPE * s).astype(jnp.bfloat16)
            d = jnp.dot(s, wf_ref[r2 * N2C:(r2 + 1) * N2C, :],
                        preferred_element_type=jnp.float32)
            y = d if y is None else y + d
        o_ref[...] = y + bfv_ref[...]        # lane-dense (tile_b, NPAD) f32 store

    # constant-index weights: single-buffer (halves their resident VMEM)
    wconst = {"pipeline_mode": pl.Buffered(1)} if buffered_weights else {}

    @jax.jit
    def fwd(x_nchw, b1m, b1v, b2m, b2v, wf, bfv):
        B = x_nchw.shape[0]
        b_pad = _round_up(B, tile_b)
        # NCHW -> zero-pad rows (conv padding) -> (row, batch, C*W) -> even/odd
        # row-parity split, so all stride-2 row gathers inside the kernel are
        # plain contiguous static slices.  x stays f32 (cast in-kernel).
        xp = jnp.pad(x_nchw, ((0, b_pad - B), (0, 0), (1, 1), (0, 0)))
        xt = jnp.transpose(xp, (2, 0, 1, 3)).reshape(H + 2, b_pad, C * W)
        x_eo = jnp.concatenate([xt[0::2], xt[1::2]], axis=0)
        n_rows = x_eo.shape[0]

        return pl.pallas_call(
            kernel,
            out_shape=jax.ShapeDtypeStruct((b_pad, NPAD), jnp.float32),
            grid=(b_pad // tile_b,),
            in_specs=[
                pl.BlockSpec((n_rows, tile_b, CW), lambda i: (0, i, 0)),   # x tile (streamed)
                pl.BlockSpec((3, CW, N1C), lambda i: (0, 0, 0), **wconst),  # conv1 taps
                pl.BlockSpec((1, N1C), lambda i: (0, 0), **wconst),         # conv1 bias
                pl.BlockSpec((3, N1C, N2C), lambda i: (0, 0, 0), **wconst),  # conv2 taps
                pl.BlockSpec((1, N2C), lambda i: (0, 0), **wconst),         # conv2 bias
                pl.BlockSpec((H2 * N2C, NPAD), lambda i: (0, 0), **wconst),  # fused FC
                pl.BlockSpec((1, NPAD), lambda i: (0, 0), **wconst),        # FC bias
            ],
            out_specs=pl.BlockSpec((tile_b, NPAD), lambda i: (i, 0)),
            compiler_params=pltpu.CompilerParams(
                dimension_semantics=("parallel",),          # v7x: shard tiles over 2 TCs
                vmem_limit_bytes=48 * 1024 * 1024),          # explicit, safe on v5e/v6e/v7x
        )(x_eo, b1m, b1v, b2m, b2v, wf, bfv)

    return fwd


# ----------------------------------------------------------------------------
# Encoder (deterministic synthetic parameters)
# ----------------------------------------------------------------------------
class PallasEncoder:
    def __init__(self, input_shape, code_length, variational=False,
                 conditional=False, seed=0):
        C, H, W = input_shape
        self.input_shape = input_shape
        self.code_length = code_length
        self.variational = variational
        self.conditional = conditional     # _set_conditional is a no-op in the base class
        self.n_fc = 2 if variational else 1

        key = jax.random.PRNGKey(seed)
        ks = jax.random.split(key, 8)
        # raw PyTorch-style parameters (f32, also used by the reference check)
        self.w1 = 0.1 * jax.random.normal(ks[0], (16, C, 3, 3), jnp.float32)
        self.b1 = 0.1 * jax.random.normal(ks[1], (16,), jnp.float32)
        self.w2 = 0.1 * jax.random.normal(ks[2], (32, 16, 3, 3), jnp.float32)
        self.b2 = 0.1 * jax.random.normal(ks[3], (32,), jnp.float32)

        H1, W1 = _conv_out(H), _conv_out(W)
        H2, W2 = _conv_out(H1), _conv_out(W1)
        self.deepest_shape = (32, H2, W2)
        fin = reduce(mul, self.deepest_shape)

        self.fc_w, self.fc_b = [], []
        for i in range(self.n_fc):
            self.fc_w.append(0.05 * jax.random.normal(
                ks[4 + 2 * i], (code_length, fin), jnp.float32))
            self.fc_b.append(0.05 * jax.random.normal(
                ks[5 + 2 * i], (code_length,), jnp.float32))

        # ---- one-time lowering into banded tap matrices (all N dims 128-padded) ----
        N1C = _round_up(16 * W1, LANE)
        N2C = _round_up(32 * W2, LANE)
        n_out = self.n_fc * code_length
        NPAD = _round_up(n_out, LANE)
        self._n_out = n_out

        B1, b1row = _conv1_tap_mats(np.asarray(self.w1), np.asarray(self.b1),
                                    C, H, W, W1, N1C)
        B2, b2row = _conv2_tap_mats(np.asarray(self.w2), np.asarray(self.b2),
                                    16, W1, W2, N1C, N2C)
        Wf, bfv = _fc_mat(self.fc_w, self.fc_b, 32, H2, W2, N2C, NPAD, code_length)

        # device-resident kernel operands: bf16 GEMM matrices, f32 biases
        # (fp8 e4m3 would be a v7x-only further compression option)
        self.b1m = jnp.asarray(B1, jnp.bfloat16)
        self.b2m = jnp.asarray(B2, jnp.bfloat16)
        self.wfm = jnp.asarray(Wf, jnp.bfloat16)
        self.b1v = jnp.asarray(b1row, jnp.float32)
        self.b2v = jnp.asarray(b2row, jnp.float32)
        self.bfv = jnp.asarray(bfv, jnp.float32)

        self._dims = dict(C=C, H=H, W=W, H1=H1, W1=W1, H2=H2, W2=W2,
                          n_even=(H + 3) // 2, CW=C * W,
                          N1C=N1C, N2C=N2C, NPAD=NPAD)
        self._fns = {}
        self._buffered_ok = None   # None = untried, True/False after first call

    # choose batch tile: multiple of 8, <= 256 (raiseable to 512 on v6e/v7x),
    # and >= 2 grid steps when the batch allows (keeps both v7x TCs busy).
    def _tile_for(self, B):
        b8 = _round_up(max(int(B), 1), 8)
        tile = min(256, b8)
        if b8 // tile < 2 and b8 >= 16:
            tile = max(8, _round_up(b8 // 2, 8))
        return tile

    def _run(self, x, tile_b):
        args = (x, self.b1m, self.b1v, self.b2m, self.b2v, self.wfm, self.bfv)
        if self._buffered_ok is not False:
            try:
                fn = self._fns.get((tile_b, True))
                if fn is None:
                    fn = _build_forward(self._dims, tile_b, True)
                    self._fns[(tile_b, True)] = fn
                y = fn(*args)
                self._buffered_ok = True
                return y
            except Exception:
                # pipeline_mode=pl.Buffered(1) unsupported here -> default specs
                self._buffered_ok = False
        fn = self._fns.get((tile_b, False))
        if fn is None:
            fn = _build_forward(self._dims, tile_b, False)
            self._fns[(tile_b, False)] = fn
        return fn(*args)

    def __call__(self, x_nchw):
        B = x_nchw.shape[0]
        tile_b = self._tile_for(B)
        y = self._run(x_nchw, tile_b)
        y = y[:B, :self._n_out]
        # torch.concat defaults to dim=0
        outs = [y[:, i * self.code_length:(i + 1) * self.code_length]
                for i in range(self.n_fc)]
        return outs[0] if self.n_fc == 1 else jnp.concatenate(outs, axis=0)

    # Pure-JAX f32 reference (true convolutions) used only for validation.
    def reference(self, x_nchw):
        h = lax.conv_general_dilated(
            x_nchw, self.w1, window_strides=(2, 2), padding=[(1, 1), (1, 1)],
            dimension_numbers=("NCHW", "OIHW", "NCHW"))
        h = h + self.b1[None, :, None, None]
        h = jnp.where(h >= 0, h, NEG_SLOPE * h)
        h = lax.conv_general_dilated(
            h, self.w2, window_strides=(2, 2), padding=[(1, 1), (1, 1)],
            dimension_numbers=("NCHW", "OIHW", "NCHW"))
        h = h + self.b2[None, :, None, None]
        h = jnp.where(h >= 0, h, NEG_SLOPE * h)
        h = h.reshape(x_nchw.shape[0], -1)
        outs = [h @ w.T + b for w, b in zip(self.fc_w, self.fc_b)]
        return jnp.concatenate(outs, axis=0)


if __name__ == "__main__":
    B, C, H, W = 2, 4, 16, 16
    code_length = 32

    key = jax.random.PRNGKey(0)
    x = jax.random.normal(key, (B, C, H, W), jnp.float32)

    enc = PallasEncoder(input_shape=(C, H, W), code_length=code_length,
                        variational=False, seed=0)
    out = jax.block_until_ready(enc(x))
    assert out.shape == (B, code_length), out.shape
    assert out.dtype == jnp.float32
    assert bool(jnp.all(jnp.isfinite(out)))

    ref = jax.block_until_ready(enc.reference(x))
    err = float(np.max(np.abs(np.asarray(out) - np.asarray(ref))))
    assert np.allclose(np.asarray(out), np.asarray(ref), atol=1e-1, rtol=1e-1), err

    # variational path: two FC heads, concatenated along dim 0 like torch.concat
    enc_v = PallasEncoder(input_shape=(C, H, W), code_length=code_length,
                          variational=True, seed=1)
    out_v = jax.block_until_ready(enc_v(x))
    ref_v = jax.block_until_ready(enc_v.reference(x))
    assert out_v.shape == (2 * B, code_length), out_v.shape
    assert np.allclose(np.asarray(out_v), np.asarray(ref_v), atol=1e-1, rtol=1e-1)

    print("KERNEL_OK")
</pallas_src>

<mosaic_0001>
module attributes {stable_mosaic.version = 11 : i64} {
  func.func @kernel(%arg0: i32, %arg1: memref<18x8x64xf32, #tpu.memory_space<vmem>>, %arg2: memref<3x64x128xbf16, #tpu.memory_space<vmem>>, %arg3: memref<1x128xf32, #tpu.memory_space<vmem>>, %arg4: memref<3x128x128xbf16, #tpu.memory_space<vmem>>, %arg5: memref<1x128xf32, #tpu.memory_space<vmem>>, %arg6: memref<512x128xbf16, #tpu.memory_space<vmem>>, %arg7: memref<1x128xf32, #tpu.memory_space<vmem>>, %arg8: memref<8x128xf32, #tpu.memory_space<vmem>>) attributes {dimension_semantics = [#tpu.dimension_semantics<parallel>], iteration_bounds = array<i64: 1>, scalar_prefetch = 0 : i64, scratch_operands = 0 : i64, tpu.core_type = #tpu.core_type<tc>, window_params = [{transform_indices = @transform_0, window_bounds = array<i64: 18, 8, 64>}, {pipeline_mode = #tpu.pipeline_mode<synchronous>, transform_indices = @transform_1, window_bounds = array<i64: 3, 64, 128>}, {pipeline_mode = #tpu.pipeline_mode<synchronous>, transform_indices = @transform_2, window_bounds = array<i64: 1, 128>}, {pipeline_mode = #tpu.pipeline_mode<synchronous>, transform_indices = @transform_3, window_bounds = array<i64: 3, 128, 128>}, {pipeline_mode = #tpu.pipeline_mode<synchronous>, transform_indices = @transform_4, window_bounds = array<i64: 1, 128>}, {pipeline_mode = #tpu.pipeline_mode<synchronous>, transform_indices = @transform_5, window_bounds = array<i64: 512, 128>}, {pipeline_mode = #tpu.pipeline_mode<synchronous>, transform_indices = @transform_6, window_bounds = array<i64: 1, 128>}, {transform_indices = @transform_7, window_bounds = array<i64: 8, 128>}]} {
    %c0 = arith.constant 0 : index
    %c0_0 = arith.constant 0 : index
    %c0_1 = arith.constant 0 : index
    %0 = vector.load %arg1[%c0, %c0_0, %c0_1] : memref<18x8x64xf32, #tpu.memory_space<vmem>>, vector<8x8x64xf32>
    %1 = vector.shape_cast %0 : vector<8x8x64xf32> to vector<64x64xf32>
    %2 = arith.truncf %1 : vector<64x64xf32> to vector<64x64xbf16>
    %c0_2 = arith.constant 0 : index
    %c0_3 = arith.constant 0 : index
    %c0_4 = arith.constant 0 : index
    %3 = vector.load %arg2[%c0_2, %c0_3, %c0_4] : memref<3x64x128xbf16, #tpu.memory_space<vmem>>, vector<1x64x128xbf16>
    %4 = vector.shape_cast %3 : vector<1x64x128xbf16> to vector<64x128xbf16>
    %cst = arith.constant dense<0.000000e+00> : vector<64x128xf32>
    %5 = tpu.matmul %2, %4, %cst {dimension_numbers = #tpu.dot_dimension_numbers<[1], [0], [0], [1], [0, 0, 1, 1], [], []>} : vector<64x64xbf16>, vector<64x128xbf16>, vector<64x128xf32> -> vector<64x128xf32>
    %c9 = arith.constant 9 : index
    %c0_5 = arith.constant 0 : index
    %c0_6 = arith.constant 0 : index
    %6 = vector.load %arg1[%c9, %c0_5, %c0_6] : memref<18x8x64xf32, #tpu.memory_space<vmem>>, vector<8x8x64xf32>
    %7 = vector.shape_cast %6 : vector<8x8x64xf32> to vector<64x64xf32>
    %8 = arith.truncf %7 : vector<64x64xf32> to vector<64x64xbf16>
    %c1 = arith.constant 1 : index
    %c0_7 = arith.constant 0 : index
    %c0_8 = arith.constant 0 : index
    %9 = vector.load %arg2[%c1, %c0_7, %c0_8] : memref<3x64x128xbf16, #tpu.memory_space<vmem>>, vector<1x64x128xbf16>
    %10 = vector.shape_cast %9 : vector<1x64x128xbf16> to vector<64x128xbf16>
    %cst_9 = arith.constant dense<0.000000e+00> : vector<64x128xf32>
    %11 = tpu.matmul %8, %10, %cst_9 {dimension_numbers = #tpu.dot_dimension_numbers<[1], [0], [0], [1], [0, 0, 1, 1], [], []>} : vector<64x64xbf16>, vector<64x128xbf16>, vector<64x128xf32> -> vector<64x128xf32>
    %12 = arith.addf %5, %11 : vector<64x128xf32>
    %c1_10 = arith.constant 1 : index
    %c0_11 = arith.constant 0 : index
    %c0_12 = arith.constant 0 : index
    %13 = vector.load %arg1[%c1_10, %c0_11, %c0_12] : memref<18x8x64xf32, #tpu.memory_space<vmem>>, vector<8x8x64xf32>
    %14 = vector.shape_cast %13 : vector<8x8x64xf32> to vector<64x64xf32>
    %15 = arith.truncf %14 : vector<64x64xf32> to vector<64x64xbf16>
    %c2 = arith.constant 2 : index
    %c0_13 = arith.constant 0 : index
    %c0_14 = arith.constant 0 : index
    %16 = vector.load %arg2[%c2, %c0_13, %c0_14] : memref<3x64x128xbf16, #tpu.memory_space<vmem>>, vector<1x64x128xbf16>
    %17 = vector.shape_cast %16 : vector<1x64x128xbf16> to vector<64x128xbf16>
    %cst_15 = arith.constant dense<0.000000e+00> : vector<64x128xf32>
    %18 = tpu.matmul %15, %17, %cst_15 {dimension_numbers = #tpu.dot_dimension_numbers<[1], [0], [0], [1], [0, 0, 1, 1], [], []>} : vector<64x64xbf16>, vector<64x128xbf16>, vector<64x128xf32> -> vector<64x128xf32>
    %19 = arith.addf %12, %18 : vector<64x128xf32>
    %c0_16 = arith.constant 0 : index
    %c0_17 = arith.constant 0 : index
    %20 = vector.load %arg3[%c0_16, %c0_17] : memref<1x128xf32, #tpu.memory_space<vmem>>, vector<1x128xf32>
    %21 = vector.broadcast %20 : vector<1x128xf32> to vector<64x128xf32>
    %22 = arith.addf %19, %21 : vector<64x128xf32>
    %cst_18 = arith.constant 0.000000e+00 : f32
    %23 = vector.broadcast %cst_18 : f32 to vector<64x128xf32>
    %24 = arith.cmpf oge, %22, %23 : vector<64x128xf32>
    %cst_19 = arith.constant 0.00999999977 : f32
    %25 = vector.broadcast %cst_19 : f32 to vector<64x128xf32>
    %26 = arith.mulf %25, %22 : vector<64x128xf32>
    %27 = arith.select %24, %22, %26 : vector<64x128xi1>, vector<64x128xf32>
    %28 = arith.truncf %27 : vector<64x128xf32> to vector<64x128xbf16>
    %c0_20 = arith.constant 0 : index
    %c0_21 = arith.constant 0 : index
    %c0_22 = arith.constant 0 : index
    %29 = vector.load %arg4[%c0_20, %c0_21, %c0_22] : memref<3x128x128xbf16, #tpu.memory_space<vmem>>, vector<1x128x128xbf16>
    %30 = vector.shape_cast %29 : vector<1x128x128xbf16> to vector<128x128xbf16>
    %c1_23 = arith.constant 1 : index
    %c0_24 = arith.constant 0 : index
    %c0_25 = arith.constant 0 : index
    %31 = vector.load %arg4[%c1_23, %c0_24, %c0_25] : memref<3x128x128xbf16, #tpu.memory_space<vmem>>, vector<1x128x128xbf16>
    %32 = vector.shape_cast %31 : vector<1x128x128xbf16> to vector<128x128xbf16>
    %c2_26 = arith.constant 2 : index
    %c0_27 = arith.constant 0 : index
    %c0_28 = arith.constant 0 : index
    %33 = vector.load %arg4[%c2_26, %c0_27, %c0_28] : memref<3x128x128xbf16, #tpu.memory_space<vmem>>, vector<1x128x128xbf16>
    %34 = vector.shape_cast %33 : vector<1x128x128xbf16> to vector<128x128xbf16>
    %35 = vector.extract_strided_slice %28 {offsets = [0, 0], sizes = [8, 128], strides = [1, 1]} : vector<64x128xbf16> to vector<8x128xbf16>
    %cst_29 = arith.constant dense<0.000000e+00> : vector<8x128xf32>
    %36 = tpu.matmul %35, %32, %cst_29 {dimension_numbers = #tpu.dot_dimension_numbers<[1], [0], [0], [1], [0, 0, 1, 1], [], []>} : vector<8x128xbf16>, vector<128x128xbf16>, vector<8x128xf32> -> vector<8x128xf32>
    %37 = vector.extract_strided_slice %28 {offsets = [8, 0], sizes = [8, 128], strides = [1, 1]} : vector<64x128xbf16> to vector<8x128xbf16>
    %cst_30 = arith.constant dense<0.000000e+00> : vector<8x128xf32>
    %38 = tpu.matmul %37, %34, %cst_30 {dimension_numbers = #tpu.dot_dimension_numbers<[1], [0], [0], [1], [0, 0, 1, 1], [], []>} : vector<8x128xbf16>, vector<128x128xbf16>, vector<8x128xf32> -> vector<8x128xf32>
    %39 = arith.addf %36, %38 : vector<8x128xf32>
    %c0_31 = arith.constant 0 : index
    %c0_32 = arith.constant 0 : index
    %40 = vector.load %arg5[%c0_31, %c0_32] : memref<1x128xf32, #tpu.memory_space<vmem>>, vector<1x128xf32>
    %41 = vector.broadcast %40 : vector<1x128xf32> to vector<8x128xf32>
    %42 = arith.addf %39, %41 : vector<8x128xf32>
    %cst_33 = arith.constant 0.000000e+00 : f32
    %43 = vector.broadcast %cst_33 : f32 to vector<8x128xf32>
    %44 = arith.cmpf oge, %42, %43 : vector<8x128xf32>
    %cst_34 = arith.constant 0.00999999977 : f32
    %45 = vector.broadcast %cst_34 : f32 to vector<8x128xf32>
    %46 = arith.mulf %45, %42 : vector<8x128xf32>
    %47 = arith.select %44, %42, %46 : vector<8x128xi1>, vector<8x128xf32>
    %48 = arith.truncf %47 : vector<8x128xf32> to vector<8x128xbf16>
    %c0_35 = arith.constant 0 : index
    %c0_36 = arith.constant 0 : index
    %49 = vector.load %arg6[%c0_35, %c0_36] : memref<512x128xbf16, #tpu.memory_space<vmem>>, vector<128x128xbf16>
    %cst_37 = arith.constant dense<0.000000e+00> : vector<8x128xf32>
    %50 = tpu.matmul %48, %49, %cst_37 {dimension_numbers = #tpu.dot_dimension_numbers<[1], [0], [0], [1], [0, 0, 1, 1], [], []>} : vector<8x128xbf16>, vector<128x128xbf16>, vector<8x128xf32> -> vector<8x128xf32>
    %51 = vector.extract_strided_slice %28 {offsets = [8, 0], sizes = [8, 128], strides = [1, 1]} : vector<64x128xbf16> to vector<8x128xbf16>
    %cst_38 = arith.constant dense<0.000000e+00> : vector<8x128xf32>
    %52 = tpu.matmul %51, %30, %cst_38 {dimension_numbers = #tpu.dot_dimension_numbers<[1], [0], [0], [1], [0, 0, 1, 1], [], []>} : vector<8x128xbf16>, vector<128x128xbf16>, vector<8x128xf32> -> vector<8x128xf32>
    %53 = vector.extract_strided_slice %28 {offsets = [16, 0], sizes = [8, 128], strides = [1, 1]} : vector<64x128xbf16> to vector<8x128xbf16>
    %cst_39 = arith.constant dense<0.000000e+00> : vector<8x128xf32>
    %54 = tpu.matmul %53, %32, %cst_39 {dimension_numbers = #tpu.dot_dimension_numbers<[1], [0], [0], [1], [0, 0, 1, 1], [], []>} : vector<8x128xbf16>, vector<128x128xbf16>, vector<8x128xf32> -> vector<8x128xf32>
    %55 = arith.addf %52, %54 : vector<8x128xf32>
    %56 = vector.extract_strided_slice %28 {offsets = [24, 0], sizes = [8, 128], strides = [1, 1]} : vector<64x128xbf16> to vector<8x128xbf16>
    %cst_40 = arith.constant dense<0.000000e+00> : vector<8x128xf32>
    %57 = tpu.matmul %56, %34, %cst_40 {dimension_numbers = #tpu.dot_dimension_numbers<[1], [0], [0], [1], [0, 0, 1, 1], [], []>} : vector<8x128xbf16>, vector<128x128xbf16>, vector<8x128xf32> -> vector<8x128xf32>
    %58 = arith.addf %55, %57 : vector<8x128xf32>
    %c0_41 = arith.constant 0 : index
    %c0_42 = arith.constant 0 : index
    %59 = vector.load %arg5[%c0_41, %c0_42] : memref<1x128xf32, #tpu.memory_space<vmem>>, vector<1x128xf32>
    %60 = vector.broadcast %59 : vector<1x128xf32> to vector<8x128xf32>
    %61 = arith.addf %58, %60 : vector<8x128xf32>
    %cst_43 = arith.constant 0.000000e+00 : f32
    %62 = vector.broadcast %cst_43 : f32 to vector<8x128xf32>
    %63 = arith.cmpf oge, %61, %62 : vector<8x128xf32>
    %cst_44 = arith.constant 0.00999999977 : f32
    %64 = vector.broadcast %cst_44 : f32 to vector<8x128xf32>
    %65 = arith.mulf %64, %61 : vector<8x128xf32>
    %66 = arith.select %63, %61, %65 : vector<8x128xi1>, vector<8x128xf32>
    %67 = arith.truncf %66 : vector<8x128xf32> to vector<8x128xbf16>
    %c128 = arith.constant 128 : index
    %c0_45 = arith.constant 0 : index
    %68 = vector.load %arg6[%c128, %c0_45] : memref<512x128xbf16, #tpu.memory_space<vmem>>, vector<128x128xbf16>
    %cst_46 = arith.constant dense<0.000000e+00> : vector<8x128xf32>
    %69 = tpu.matmul %67, %68, %cst_46 {dimension_numbers = #tpu.dot_dimension_numbers<[1], [0], [0], [1], [0, 0, 1, 1], [], []>} : vector<8x128xbf16>, vector<128x128xbf16>, vector<8x128xf32> -> vector<8x128xf32>
    %70 = arith.addf %50, %69 : vector<8x128xf32>
    %71 = vector.extract_strided_slice %28 {offsets = [24, 0], sizes = [8, 128], strides = [1, 1]} : vector<64x128xbf16> to vector<8x128xbf16>
    %cst_47 = arith.constant dense<0.000000e+00> : vector<8x128xf32>
    %72 = tpu.matmul %71, %30, %cst_47 {dimension_numbers = #tpu.dot_dimension_numbers<[1], [0], [0], [1], [0, 0, 1, 1], [], []>} : vector<8x128xbf16>, vector<128x128xbf16>, vector<8x128xf32> -> vector<8x128xf32>
    %73 = vector.extract_strided_slice %28 {offsets = [32, 0], sizes = [8, 128], strides = [1, 1]} : vector<64x128xbf16> to vector<8x128xbf16>
    %cst_48 = arith.constant dense<0.000000e+00> : vector<8x128xf32>
    %74 = tpu.matmul %73, %32, %cst_48 {dimension_numbers = #tpu.dot_dimension_numbers<[1], [0], [0], [1], [0, 0, 1, 1], [], []>} : vector<8x128xbf16>, vector<128x128xbf16>, vector<8x128xf32> -> vector<8x128xf32>
    %75 = arith.addf %72, %74 : vector<8x128xf32>
    %76 = vector.extract_strided_slice %28 {offsets = [40, 0], sizes = [8, 128], strides = [1, 1]} : vector<64x128xbf16> to vector<8x128xbf16>
    %cst_49 = arith.constant dense<0.000000e+00> : vector<8x128xf32>
    %77 = tpu.matmul %76, %34, %cst_49 {dimension_numbers = #tpu.dot_dimension_numbers<[1], [0], [0], [1], [0, 0, 1, 1], [], []>} : vector<8x128xbf16>, vector<128x128xbf16>, vector<8x128xf32> -> vector<8x128xf32>
    %78 = arith.addf %75, %77 : vector<8x128xf32>
    %c0_50 = arith.constant 0 : index
    %c0_51 = arith.constant 0 : index
    %79 = vector.load %arg5[%c0_50, %c0_51] : memref<1x128xf32, #tpu.memory_space<vmem>>, vector<1x128xf32>
    %80 = vector.broadcast %79 : vector<1x128xf32> to vector<8x128xf32>
    %81 = arith.addf %78, %80 : vector<8x128xf32>
    %cst_52 = arith.constant 0.000000e+00 : f32
    %82 = vector.broadcast %cst_52 : f32 to vector<8x128xf32>
    %83 = arith.cmpf oge, %81, %82 : vector<8x128xf32>
    %cst_53 = arith.constant 0.00999999977 : f32
    %84 = vector.broadcast %cst_53 : f32 to vector<8x128xf32>
    %85 = arith.mulf %84, %81 : vector<8x128xf32>
    %86 = arith.select %83, %81, %85 : vector<8x128xi1>, vector<8x128xf32>
    %87 = arith.truncf %86 : vector<8x128xf32> to vector<8x128xbf16>
    %c256 = arith.constant 256 : index
    %c0_54 = arith.constant 0 : index
    %88 = vector.load %arg6[%c256, %c0_54] : memref<512x128xbf16, #tpu.memory_space<vmem>>, vector<128x128xbf16>
    %cst_55 = arith.constant dense<0.000000e+00> : vector<8x128xf32>
    %89 = tpu.matmul %87, %88, %cst_55 {dimension_numbers = #tpu.dot_dimension_numbers<[1], [0], [0], [1], [0, 0, 1, 1], [], []>} : vector<8x128xbf16>, vector<128x128xbf16>, vector<8x128xf32> -> vector<8x128xf32>
    %90 = arith.addf %70, %89 : vector<8x128xf32>
    %91 = vector.extract_strided_slice %28 {offsets = [40, 0], sizes = [8, 128], strides = [1, 1]} : vector<64x128xbf16> to vector<8x128xbf16>
    %cst_56 = arith.constant dense<0.000000e+00> : vector<8x128xf32>
    %92 = tpu.matmul %91, %30, %cst_56 {dimension_numbers = #tpu.dot_dimension_numbers<[1], [0], [0], [1], [0, 0, 1, 1], [], []>} : vector<8x128xbf16>, vector<128x128xbf16>, vector<8x128xf32> -> vector<8x128xf32>
    %93 = vector.extract_strided_slice %28 {offsets = [48, 0], sizes = [8, 128], strides = [1, 1]} : vector<64x128xbf16> to vector<8x128xbf16>
    %cst_57 = arith.constant dense<0.000000e+00> : vector<8x128xf32>
    %94 = tpu.matmul %93, %32, %cst_57 {dimension_numbers = #tpu.dot_dimension_numbers<[1], [0], [0], [1], [0, 0, 1, 1], [], []>} : vector<8x128xbf16>, vector<128x128xbf16>, vector<8x128xf32> -> vector<8x128xf32>
    %95 = arith.addf %92, %94 : vector<8x128xf32>
    %96 = vector.extract_strided_slice %28 {offsets = [56, 0], sizes = [8, 128], strides = [1, 1]} : vector<64x128xbf16> to vector<8x128xbf16>
    %cst_58 = arith.constant dense<0.000000e+00> : vector<8x128xf32>
    %97 = tpu.matmul %96, %34, %cst_58 {dimension_numbers = #tpu.dot_dimension_numbers<[1], [0], [0], [1], [0, 0, 1, 1], [], []>} : vector<8x128xbf16>, vector<128x128xbf16>, vector<8x128xf32> -> vector<8x128xf32>
    %98 = arith.addf %95, %97 : vector<8x128xf32>
    %c0_59 = arith.constant 0 : index
    %c0_60 = arith.constant 0 : index
    %99 = vector.load %arg5[%c0_59, %c0_60] : memref<1x128xf32, #tpu.memory_space<vmem>>, vector<1x128xf32>
    %100 = vector.broadcast %99 : vector<1x128xf32> to vector<8x128xf32>
    %101 = arith.addf %98, %100 : vector<8x128xf32>
    %cst_61 = arith.constant 0.000000e+00 : f32
    %102 = vector.broadcast %cst_61 : f32 to vector<8x128xf32>
    %103 = arith.cmpf oge, %101, %102 : vector<8x128xf32>
    %cst_62 = arith.constant 0.00999999977 : f32
    %104 = vector.broadcast %cst_62 : f32 to vector<8x128xf32>
    %105 = arith.mulf %104, %101 : vector<8x128xf32>
    %106 = arith.select %103, %101, %105 : vector<8x128xi1>, vector<8x128xf32>
    %107 = arith.truncf %106 : vector<8x128xf32> to vector<8x128xbf16>
    %c384 = arith.constant 384 : index
    %c0_63 = arith.constant 0 : index
    %108 = vector.load %arg6[%c384, %c0_63] : memref<512x128xbf16, #tpu.memory_space<vmem>>, vector<128x128xbf16>
    %cst_64 = arith.constant dense<0.000000e+00> : vector<8x128xf32>
    %109 = tpu.matmul %107, %108, %cst_64 {dimension_numbers = #tpu.dot_dimension_numbers<[1], [0], [0], [1], [0, 0, 1, 1], [], []>} : vector<8x128xbf16>, vector<128x128xbf16>, vector<8x128xf32> -> vector<8x128xf32>
    %110 = arith.addf %90, %109 : vector<8x128xf32>
    %c0_65 = arith.constant 0 : index
    %c0_66 = arith.constant 0 : index
    %111 = vector.load %arg7[%c0_65, %c0_66] : memref<1x128xf32, #tpu.memory_space<vmem>>, vector<1x128xf32>
    %112 = vector.broadcast %111 : vector<1x128xf32> to vector<8x128xf32>
    %113 = arith.addf %110, %112 : vector<8x128xf32>
    %c0_67 = arith.constant 0 : index
    %c0_68 = arith.constant 0 : index
    %114 = vector.load %arg8[%c0_67, %c0_68] : memref<8x128xf32, #tpu.memory_space<vmem>>, vector<8x128xf32>
    tpu.vector_store %arg8[%c0_67, %c0_68], %113 {strides = array<i32>} : memref<8x128xf32, #tpu.memory_space<vmem>>, vector<8x128xf32>,
    return
  }
  func.func @transform_0(%arg0: i32) -> (i32, i32, i32) {
    %c0_i32 = arith.constant 0 : i32
    %c0_i32_0 = arith.constant 0 : i32
    %c0_i32_1 = arith.constant 0 : i32
    return %c0_i32, %arg0, %c0_i32_0 : i32, i32, i32
  }
  func.func @transform_1(%arg0: i32) -> (i32, i32, i32) {
    %c0_i32 = arith.constant 0 : i32
    %c0_i32_0 = arith.constant 0 : i32
    %c0_i32_1 = arith.constant 0 : i32
    %c0_i32_2 = arith.constant 0 : i32
    return %c0_i32, %c0_i32_0, %c0_i32_1 : i32, i32, i32
  }
  func.func @transform_2(%arg0: i32) -> (i32, i32) {
    %c0_i32 = arith.constant 0 : i32
    %c0_i32_0 = arith.constant 0 : i32
    %c0_i32_1 = arith.constant 0 : i32
    return %c0_i32, %c0_i32_0 : i32, i32
  }
  func.func @transform_3(%arg0: i32) -> (i32, i32, i32) {
    %c0_i32 = arith.constant 0 : i32
    %c0_i32_0 = arith.constant 0 : i32
    %c0_i32_1 = arith.constant 0 : i32
    %c0_i32_2 = arith.constant 0 : i32
    return %c0_i32, %c0_i32_0, %c0_i32_1 : i32, i32, i32
  }
  func.func @transform_4(%arg0: i32) -> (i32, i32) {
    %c0_i32 = arith.constant 0 : i32
    %c0_i32_0 = arith.constant 0 : i32
    %c0_i32_1 = arith.constant 0 : i32
    return %c0_i32, %c0_i32_0 : i32, i32
  }
  func.func @transform_5(%arg0: i32) -> (i32, i32) {
    %c0_i32 = arith.constant 0 : i32
    %c0_i32_0 = arith.constant 0 : i32
    %c0_i32_1 = arith.constant 0 : i32
    return %c0_i32, %c0_i32_0 : i32, i32
  }
  func.func @transform_6(%arg0: i32) -> (i32, i32) {
    %c0_i32 = arith.constant 0 : i32
    %c0_i32_0 = arith.constant 0 : i32
    %c0_i32_1 = arith.constant 0 : i32
    return %c0_i32, %c0_i32_0 : i32, i32
  }
  func.func @transform_7(%arg0: i32) -> (i32, i32) {
    %c0_i32 = arith.constant 0 : i32
    %c0_i32_0 = arith.constant 0 : i32
    return %arg0, %c0_i32 : i32, i32
  }
}

module attributes {stable_mosaic.version = 11 : i64} {
  func.func @kernel(%arg0: i32, %arg1: memref<18x8x64xf32, #tpu.memory_space<vmem>>, %arg2: memref<3x64x128xbf16, #tpu.memory_space<vmem>>, %arg3: memref<1x128xf32, #tpu.memory_space<vmem>>, %arg4: memref<3x128x128xbf16, #tpu.memory_space<vmem>>, %arg5: memref<1x128xf32, #tpu.memory_space<vmem>>, %arg6: memref<512x128xbf16, #tpu.memory_space<vmem>>, %arg7: memref<1x128xf32, #tpu.memory_space<vmem>>, %arg8: memref<8x128xf32, #tpu.memory_space<vmem>>) attributes {dimension_semantics = [#tpu.dimension_semantics<parallel>], iteration_bounds = array<i64: 1>, scalar_prefetch = 0 : i64, scratch_operands = 0 : i64, tpu.core_type = #tpu.core_type<tc>, window_params = [{transform_indices = @transform_0, window_bounds = array<i64: 18, 8, 64>}, {pipeline_mode = #tpu.pipeline_mode<synchronous>, transform_indices = @transform_1, window_bounds = array<i64: 3, 64, 128>}, {pipeline_mode = #tpu.pipeline_mode<synchronous>, transform_indices = @transform_2, window_bounds = array<i64: 1, 128>}, {pipeline_mode = #tpu.pipeline_mode<synchronous>, transform_indices = @transform_3, window_bounds = array<i64: 3, 128, 128>}, {pipeline_mode = #tpu.pipeline_mode<synchronous>, transform_indices = @transform_4, window_bounds = array<i64: 1, 128>}, {pipeline_mode = #tpu.pipeline_mode<synchronous>, transform_indices = @transform_5, window_bounds = array<i64: 512, 128>}, {pipeline_mode = #tpu.pipeline_mode<synchronous>, transform_indices = @transform_6, window_bounds = array<i64: 1, 128>}, {transform_indices = @transform_7, window_bounds = array<i64: 8, 128>}]} {
    %c0 = arith.constant 0 : index
    %c0_0 = arith.constant 0 : index
    %c0_1 = arith.constant 0 : index
    %0 = vector.load %arg1[%c0, %c0_0, %c0_1] : memref<18x8x64xf32, #tpu.memory_space<vmem>>, vector<8x8x64xf32>
    %1 = vector.shape_cast %0 : vector<8x8x64xf32> to vector<64x64xf32>
    %2 = arith.truncf %1 : vector<64x64xf32> to vector<64x64xbf16>
    %c0_2 = arith.constant 0 : index
    %c0_3 = arith.constant 0 : index
    %c0_4 = arith.constant 0 : index
    %3 = vector.load %arg2[%c0_2, %c0_3, %c0_4] : memref<3x64x128xbf16, #tpu.memory_space<vmem>>, vector<1x64x128xbf16>
    %4 = vector.shape_cast %3 : vector<1x64x128xbf16> to vector<64x128xbf16>
    %cst = arith.constant dense<0.000000e+00> : vector<64x128xf32>
    %5 = tpu.matmul %2, %4, %cst {dimension_numbers = #tpu.dot_dimension_numbers<[1], [0], [0], [1], [0, 0, 1, 1], [], []>} : vector<64x64xbf16>, vector<64x128xbf16>, vector<64x128xf32> -> vector<64x128xf32>
    %c9 = arith.constant 9 : index
    %c0_5 = arith.constant 0 : index
    %c0_6 = arith.constant 0 : index
    %6 = vector.load %arg1[%c9, %c0_5, %c0_6] : memref<18x8x64xf32, #tpu.memory_space<vmem>>, vector<8x8x64xf32>
    %7 = vector.shape_cast %6 : vector<8x8x64xf32> to vector<64x64xf32>
    %8 = arith.truncf %7 : vector<64x64xf32> to vector<64x64xbf16>
    %c1 = arith.constant 1 : index
    %c0_7 = arith.constant 0 : index
    %c0_8 = arith.constant 0 : index
    %9 = vector.load %arg2[%c1, %c0_7, %c0_8] : memref<3x64x128xbf16, #tpu.memory_space<vmem>>, vector<1x64x128xbf16>
    %10 = vector.shape_cast %9 : vector<1x64x128xbf16> to vector<64x128xbf16>
    %cst_9 = arith.constant dense<0.000000e+00> : vector<64x128xf32>
    %11 = tpu.matmul %8, %10, %cst_9 {dimension_numbers = #tpu.dot_dimension_numbers<[1], [0], [0], [1], [0, 0, 1, 1], [], []>} : vector<64x64xbf16>, vector<64x128xbf16>, vector<64x128xf32> -> vector<64x128xf32>
    %12 = arith.addf %5, %11 : vector<64x128xf32>
    %c1_10 = arith.constant 1 : index
    %c0_11 = arith.constant 0 : index
    %c0_12 = arith.constant 0 : index
    %13 = vector.load %arg1[%c1_10, %c0_11, %c0_12] : memref<18x8x64xf32, #tpu.memory_space<vmem>>, vector<8x8x64xf32>
    %14 = vector.shape_cast %13 : vector<8x8x64xf32> to vector<64x64xf32>
    %15 = arith.truncf %14 : vector<64x64xf32> to vector<64x64xbf16>
    %c2 = arith.constant 2 : index
    %c0_13 = arith.constant 0 : index
    %c0_14 = arith.constant 0 : index
    %16 = vector.load %arg2[%c2, %c0_13, %c0_14] : memref<3x64x128xbf16, #tpu.memory_space<vmem>>, vector<1x64x128xbf16>
    %17 = vector.shape_cast %16 : vector<1x64x128xbf16> to vector<64x128xbf16>
    %cst_15 = arith.constant dense<0.000000e+00> : vector<64x128xf32>
    %18 = tpu.matmul %15, %17, %cst_15 {dimension_numbers = #tpu.dot_dimension_numbers<[1], [0], [0], [1], [0, 0, 1, 1], [], []>} : vector<64x64xbf16>, vector<64x128xbf16>, vector<64x128xf32> -> vector<64x128xf32>
    %19 = arith.addf %12, %18 : vector<64x128xf32>
    %c0_16 = arith.constant 0 : index
    %c0_17 = arith.constant 0 : index
    %20 = vector.load %arg3[%c0_16, %c0_17] : memref<1x128xf32, #tpu.memory_space<vmem>>, vector<1x128xf32>
    %21 = vector.broadcast %20 : vector<1x128xf32> to vector<64x128xf32>
    %22 = arith.addf %19, %21 : vector<64x128xf32>
    %cst_18 = arith.constant 0.000000e+00 : f32
    %23 = vector.broadcast %cst_18 : f32 to vector<64x128xf32>
    %24 = arith.cmpf oge, %22, %23 : vector<64x128xf32>
    %cst_19 = arith.constant 0.00999999977 : f32
    %25 = vector.broadcast %cst_19 : f32 to vector<64x128xf32>
    %26 = arith.mulf %25, %22 : vector<64x128xf32>
    %27 = arith.select %24, %22, %26 : vector<64x128xi1>, vector<64x128xf32>
    %28 = arith.truncf %27 : vector<64x128xf32> to vector<64x128xbf16>
    %c0_20 = arith.constant 0 : index
    %c0_21 = arith.constant 0 : index
    %c0_22 = arith.constant 0 : index
    %29 = vector.load %arg4[%c0_20, %c0_21, %c0_22] : memref<3x128x128xbf16, #tpu.memory_space<vmem>>, vector<1x128x128xbf16>
    %30 = vector.shape_cast %29 : vector<1x128x128xbf16> to vector<128x128xbf16>
    %c1_23 = arith.constant 1 : index
    %c0_24 = arith.constant 0 : index
    %c0_25 = arith.constant 0 : index
    %31 = vector.load %arg4[%c1_23, %c0_24, %c0_25] : memref<3x128x128xbf16, #tpu.memory_space<vmem>>, vector<1x128x128xbf16>
    %32 = vector.shape_cast %31 : vector<1x128x128xbf16> to vector<128x128xbf16>
    %c2_26 = arith.constant 2 : index
    %c0_27 = arith.constant 0 : index
    %c0_28 = arith.constant 0 : index
    %33 = vector.load %arg4[%c2_26, %c0_27, %c0_28] : memref<3x128x128xbf16, #tpu.memory_space<vmem>>, vector<1x128x128xbf16>
    %34 = vector.shape_cast %33 : vector<1x128x128xbf16> to vector<128x128xbf16>
    %35 = vector.extract_strided_slice %28 {offsets = [0, 0], sizes = [8, 128], strides = [1, 1]} : vector<64x128xbf16> to vector<8x128xbf16>
    %cst_29 = arith.constant dense<0.000000e+00> : vector<8x128xf32>
    %36 = tpu.matmul %35, %32, %cst_29 {dimension_numbers = #tpu.dot_dimension_numbers<[1], [0], [0], [1], [0, 0, 1, 1], [], []>} : vector<8x128xbf16>, vector<128x128xbf16>, vector<8x128xf32> -> vector<8x128xf32>
    %37 = vector.extract_strided_slice %28 {offsets = [8, 0], sizes = [8, 128], strides = [1, 1]} : vector<64x128xbf16> to vector<8x128xbf16>
    %cst_30 = arith.constant dense<0.000000e+00> : vector<8x128xf32>
    %38 = tpu.matmul %37, %34, %cst_30 {dimension_numbers = #tpu.dot_dimension_numbers<[1], [0], [0], [1], [0, 0, 1, 1], [], []>} : vector<8x128xbf16>, vector<128x128xbf16>, vector<8x128xf32> -> vector<8x128xf32>
    %39 = arith.addf %36, %38 : vector<8x128xf32>
    %c0_31 = arith.constant 0 : index
    %c0_32 = arith.constant 0 : index
    %40 = vector.load %arg5[%c0_31, %c0_32] : memref<1x128xf32, #tpu.memory_space<vmem>>, vector<1x128xf32>
    %41 = vector.broadcast %40 : vector<1x128xf32> to vector<8x128xf32>
    %42 = arith.addf %39, %41 : vector<8x128xf32>
    %cst_33 = arith.constant 0.000000e+00 : f32
    %43 = vector.broadcast %cst_33 : f32 to vector<8x128xf32>
    %44 = arith.cmpf oge, %42, %43 : vector<8x128xf32>
    %cst_34 = arith.constant 0.00999999977 : f32
    %45 = vector.broadcast %cst_34 : f32 to vector<8x128xf32>
    %46 = arith.mulf %45, %42 : vector<8x128xf32>
    %47 = arith.select %44, %42, %46 : vector<8x128xi1>, vector<8x128xf32>
    %48 = arith.truncf %47 : vector<8x128xf32> to vector<8x128xbf16>
    %c0_35 = arith.constant 0 : index
    %c0_36 = arith.constant 0 : index
    %49 = vector.load %arg6[%c0_35, %c0_36] : memref<512x128xbf16, #tpu.memory_space<vmem>>, vector<128x128xbf16>
    %cst_37 = arith.constant dense<0.000000e+00> : vector<8x128xf32>
    %50 = tpu.matmul %48, %49, %cst_37 {dimension_numbers = #tpu.dot_dimension_numbers<[1], [0], [0], [1], [0, 0, 1, 1], [], []>} : vector<8x128xbf16>, vector<128x128xbf16>, vector<8x128xf32> -> vector<8x128xf32>
    %51 = vector.extract_strided_slice %28 {offsets = [8, 0], sizes = [8, 128], strides = [1, 1]} : vector<64x128xbf16> to vector<8x128xbf16>
    %cst_38 = arith.constant dense<0.000000e+00> : vector<8x128xf32>
    %52 = tpu.matmul %51, %30, %cst_38 {dimension_numbers = #tpu.dot_dimension_numbers<[1], [0], [0], [1], [0, 0, 1, 1], [], []>} : vector<8x128xbf16>, vector<128x128xbf16>, vector<8x128xf32> -> vector<8x128xf32>
    %53 = vector.extract_strided_slice %28 {offsets = [16, 0], sizes = [8, 128], strides = [1, 1]} : vector<64x128xbf16> to vector<8x128xbf16>
    %cst_39 = arith.constant dense<0.000000e+00> : vector<8x128xf32>
    %54 = tpu.matmul %53, %32, %cst_39 {dimension_numbers = #tpu.dot_dimension_numbers<[1], [0], [0], [1], [0, 0, 1, 1], [], []>} : vector<8x128xbf16>, vector<128x128xbf16>, vector<8x128xf32> -> vector<8x128xf32>
    %55 = arith.addf %52, %54 : vector<8x128xf32>
    %56 = vector.extract_strided_slice %28 {offsets = [24, 0], sizes = [8, 128], strides = [1, 1]} : vector<64x128xbf16> to vector<8x128xbf16>
    %cst_40 = arith.constant dense<0.000000e+00> : vector<8x128xf32>
    %57 = tpu.matmul %56, %34, %cst_40 {dimension_numbers = #tpu.dot_dimension_numbers<[1], [0], [0], [1], [0, 0, 1, 1], [], []>} : vector<8x128xbf16>, vector<128x128xbf16>, vector<8x128xf32> -> vector<8x128xf32>
    %58 = arith.addf %55, %57 : vector<8x128xf32>
    %c0_41 = arith.constant 0 : index
    %c0_42 = arith.constant 0 : index
    %59 = vector.load %arg5[%c0_41, %c0_42] : memref<1x128xf32, #tpu.memory_space<vmem>>, vector<1x128xf32>
    %60 = vector.broadcast %59 : vector<1x128xf32> to vector<8x128xf32>
    %61 = arith.addf %58, %60 : vector<8x128xf32>
    %cst_43 = arith.constant 0.000000e+00 : f32
    %62 = vector.broadcast %cst_43 : f32 to vector<8x128xf32>
    %63 = arith.cmpf oge, %61, %62 : vector<8x128xf32>
    %cst_44 = arith.constant 0.00999999977 : f32
    %64 = vector.broadcast %cst_44 : f32 to vector<8x128xf32>
    %65 = arith.mulf %64, %61 : vector<8x128xf32>
    %66 = arith.select %63, %61, %65 : vector<8x128xi1>, vector<8x128xf32>
    %67 = arith.truncf %66 : vector<8x128xf32> to vector<8x128xbf16>
    %c128 = arith.constant 128 : index
    %c0_45 = arith.constant 0 : index
    %68 = vector.load %arg6[%c128, %c0_45] : memref<512x128xbf16, #tpu.memory_space<vmem>>, vector<128x128xbf16>
    %cst_46 = arith.constant dense<0.000000e+00> : vector<8x128xf32>
    %69 = tpu.matmul %67, %68, %cst_46 {dimension_numbers = #tpu.dot_dimension_numbers<[1], [0], [0], [1], [0, 0, 1, 1], [], []>} : vector<8x128xbf16>, vector<128x128xbf16>, vector<8x128xf32> -> vector<8x128xf32>
    %70 = arith.addf %50, %69 : vector<8x128xf32>
    %71 = vector.extract_strided_slice %28 {offsets = [24, 0], sizes = [8, 128], strides = [1, 1]} : vector<64x128xbf16> to vector<8x128xbf16>
    %cst_47 = arith.constant dense<0.000000e+00> : vector<8x128xf32>
    %72 = tpu.matmul %71, %30, %cst_47 {dimension_numbers = #tpu.dot_dimension_numbers<[1], [0], [0], [1], [0, 0, 1, 1], [], []>} : vector<8x128xbf16>, vector<128x128xbf16>, vector<8x128xf32> -> vector<8x128xf32>
    %73 = vector.extract_strided_slice %28 {offsets = [32, 0], sizes = [8, 128], strides = [1, 1]} : vector<64x128xbf16> to vector<8x128xbf16>
    %cst_48 = arith.constant dense<0.000000e+00> : vector<8x128xf32>
    %74 = tpu.matmul %73, %32, %cst_48 {dimension_numbers = #tpu.dot_dimension_numbers<[1], [0], [0], [1], [0, 0, 1, 1], [], []>} : vector<8x128xbf16>, vector<128x128xbf16>, vector<8x128xf32> -> vector<8x128xf32>
    %75 = arith.addf %72, %74 : vector<8x128xf32>
    %76 = vector.extract_strided_slice %28 {offsets = [40, 0], sizes = [8, 128], strides = [1, 1]} : vector<64x128xbf16> to vector<8x128xbf16>
    %cst_49 = arith.constant dense<0.000000e+00> : vector<8x128xf32>
    %77 = tpu.matmul %76, %34, %cst_49 {dimension_numbers = #tpu.dot_dimension_numbers<[1], [0], [0], [1], [0, 0, 1, 1], [], []>} : vector<8x128xbf16>, vector<128x128xbf16>, vector<8x128xf32> -> vector<8x128xf32>
    %78 = arith.addf %75, %77 : vector<8x128xf32>
    %c0_50 = arith.constant 0 : index
    %c0_51 = arith.constant 0 : index
    %79 = vector.load %arg5[%c0_50, %c0_51] : memref<1x128xf32, #tpu.memory_space<vmem>>, vector<1x128xf32>
    %80 = vector.broadcast %79 : vector<1x128xf32> to vector<8x128xf32>
    %81 = arith.addf %78, %80 : vector<8x128xf32>
    %cst_52 = arith.constant 0.000000e+00 : f32
    %82 = vector.broadcast %cst_52 : f32 to vector<8x128xf32>
    %83 = arith.cmpf oge, %81, %82 : vector<8x128xf32>
    %cst_53 = arith.constant 0.00999999977 : f32
    %84 = vector.broadcast %cst_53 : f32 to vector<8x128xf32>
    %85 = arith.mulf %84, %81 : vector<8x128xf32>
    %86 = arith.select %83, %81, %85 : vector<8x128xi1>, vector<8x128xf32>
    %87 = arith.truncf %86 : vector<8x128xf32> to vector<8x128xbf16>
    %c256 = arith.constant 256 : index
    %c0_54 = arith.constant 0 : index
    %88 = vector.load %arg6[%c256, %c0_54] : memref<512x128xbf16, #tpu.memory_space<vmem>>, vector<128x128xbf16>
    %cst_55 = arith.constant dense<0.000000e+00> : vector<8x128xf32>
    %89 = tpu.matmul %87, %88, %cst_55 {dimension_numbers = #tpu.dot_dimension_numbers<[1], [0], [0], [1], [0, 0, 1, 1], [], []>} : vector<8x128xbf16>, vector<128x128xbf16>, vector<8x128xf32> -> vector<8x128xf32>
    %90 = arith.addf %70, %89 : vector<8x128xf32>
    %91 = vector.extract_strided_slice %28 {offsets = [40, 0], sizes = [8, 128], strides = [1, 1]} : vector<64x128xbf16> to vector<8x128xbf16>
    %cst_56 = arith.constant dense<0.000000e+00> : vector<8x128xf32>
    %92 = tpu.matmul %91, %30, %cst_56 {dimension_numbers = #tpu.dot_dimension_numbers<[1], [0], [0], [1], [0, 0, 1, 1], [], []>} : vector<8x128xbf16>, vector<128x128xbf16>, vector<8x128xf32> -> vector<8x128xf32>
    %93 = vector.extract_strided_slice %28 {offsets = [48, 0], sizes = [8, 128], strides = [1, 1]} : vector<64x128xbf16> to vector<8x128xbf16>
    %cst_57 = arith.constant dense<0.000000e+00> : vector<8x128xf32>
    %94 = tpu.matmul %93, %32, %cst_57 {dimension_numbers = #tpu.dot_dimension_numbers<[1], [0], [0], [1], [0, 0, 1, 1], [], []>} : vector<8x128xbf16>, vector<128x128xbf16>, vector<8x128xf32> -> vector<8x128xf32>
    %95 = arith.addf %92, %94 : vector<8x128xf32>
    %96 = vector.extract_strided_slice %28 {offsets = [56, 0], sizes = [8, 128], strides = [1, 1]} : vector<64x128xbf16> to vector<8x128xbf16>
    %cst_58 = arith.constant dense<0.000000e+00> : vector<8x128xf32>
    %97 = tpu.matmul %96, %34, %cst_58 {dimension_numbers = #tpu.dot_dimension_numbers<[1], [0], [0], [1], [0, 0, 1, 1], [], []>} : vector<8x128xbf16>, vector<128x128xbf16>, vector<8x128xf32> -> vector<8x128xf32>
    %98 = arith.addf %95, %97 : vector<8x128xf32>
    %c0_59 = arith.constant 0 : index
    %c0_60 = arith.constant 0 : index
    %99 = vector.load %arg5[%c0_59, %c0_60] : memref<1x128xf32, #tpu.memory_space<vmem>>, vector<1x128xf32>
    %100 = vector.broadcast %99 : vector<1x128xf32> to vector<8x128xf32>
    %101 = arith.addf %98, %100 : vector<8x128xf32>
    %cst_61 = arith.constant 0.000000e+00 : f32
    %102 = vector.broadcast %cst_61 : f32 to vector<8x128xf32>
    %103 = arith.cmpf oge, %101, %102 : vector<8x128xf32>
    %cst_62 = arith.constant 0.00999999977 : f32
    %104 = vector.broadcast %cst_62 : f32 to vector<8x128xf32>
    %105 = arith.mulf %104, %101 : vector<8x128xf32>
    %106 = arith.select %103, %101, %105 : vector<8x128xi1>, vector<8x128xf32>
    %107 = arith.truncf %106 : vector<8x128xf32> to vector<8x128xbf16>
    %c384 = arith.constant 384 : index
    %c0_63 = arith.constant 0 : index
    %108 = vector.load %arg6[%c384, %c0_63] : memref<512x128xbf16, #tpu.memory_space<vmem>>, vector<128x128xbf16>
    %cst_64 = arith.constant dense<0.000000e+00> : vector<8x128xf32>
    %109 = tpu.matmul %107, %108, %cst_64 {dimension_numbers = #tpu.dot_dimension_numbers<[1], [0], [0], [1], [0, 0, 1, 1], [], []>} : vector<8x128xbf16>, vector<128x128xbf16>, vector<8x128xf32> -> vector<8x128xf32>
    %110 = arith.addf %90, %109 : vector<8x128xf32>
    %c0_65 = arith.constant 0 : index
    %c0_66 = arith.constant 0 : index
    %111 = vector.load %arg7[%c0_65, %c0_66] : memref<1x128xf32, #tpu.memory_space<vmem>>, vector<1x128xf32>
    %112 = vector.broadcast %111 : vector<1x128xf32> to vector<8x128xf32>
    %113 = arith.addf %110, %112 : vector<8x128xf32>
    %c0_67 = arith.constant 0 : index
    %c0_68 = arith.constant 0 : index
    %114 = vector.load %arg8[%c0_67, %c0_68] : memref<8x128xf32, #tpu.memory_space<vmem>>, vector<8x128xf32>
    tpu.vector_store %arg8[%c0_67, %c0_68], %113 {strides = array<i32>} : memref<8x128xf32, #tpu.memory_space<vmem>>, vector<8x128xf32>,
    return
  }
  func.func @transform_0(%arg0: i32) -> (i32, i32, i32) {
    %c0_i32 = arith.constant 0 : i32
    %c0_i32_0 = arith.constant 0 : i32
    %c0_i32_1 = arith.constant 0 : i32
    return %c0_i32, %arg0, %c0_i32_0 : i32, i32, i32
  }
  func.func @transform_1(%arg0: i32) -> (i32, i32, i32) {
    %c0_i32 = arith.constant 0 : i32
    %c0_i32_0 = arith.constant 0 : i32
    %c0_i32_1 = arith.constant 0 : i32
    %c0_i32_2 = arith.constant 0 : i32
    return %c0_i32, %c0_i32_0, %c0_i32_1 : i32, i32, i32
  }
  func.func @transform_2(%arg0: i32) -> (i32, i32) {
    %c0_i32 = arith.constant 0 : i32
    %c0_i32_0 = arith.constant 0 : i32
    %c0_i32_1 = arith.constant 0 : i32
    return %c0_i32, %c0_i32_0 : i32, i32
  }
  func.func @transform_3(%arg0: i32) -> (i32, i32, i32) {
    %c0_i32 = arith.constant 0 : i32
    %c0_i32_0 = arith.constant 0 : i32
    %c0_i32_1 = arith.constant 0 : i32
    %c0_i32_2 = arith.constant 0 : i32
    return %c0_i32, %c0_i32_0, %c0_i32_1 : i32, i32, i32
  }
  func.func @transform_4(%arg0: i32) -> (i32, i32) {
    %c0_i32 = arith.constant 0 : i32
    %c0_i32_0 = arith.constant 0 : i32
    %c0_i32_1 = arith.constant 0 : i32
    return %c0_i32, %c0_i32_0 : i32, i32
  }
  func.func @transform_5(%arg0: i32) -> (i32, i32) {
    %c0_i32 = arith.constant 0 : i32
    %c0_i32_0 = arith.constant 0 : i32
    %c0_i32_1 = arith.constant 0 : i32
    return %c0_i32, %c0_i32_0 : i32, i32
  }
  func.func @transform_6(%arg0: i32) -> (i32, i32) {
    %c0_i32 = arith.constant 0 : i32
    %c0_i32_0 = arith.constant 0 : i32
    %c0_i32_1 = arith.constant 0 : i32
    return %c0_i32, %c0_i32_0 : i32, i32
  }
  func.func @transform_7(%arg0: i32) -> (i32, i32) {
    %c0_i32 = arith.constant 0 : i32
    %c0_i32_0 = arith.constant 0 : i32
    return %arg0, %c0_i32 : i32, i32
  }
}

</mosaic_0001>

<bundles_post_ra>
// kernel: fwd.1
= control target key start
LH: loop header
LB: loop body
LE: loop exit
PB: predicated region body
PF: predicated region fallthrough
CT: control target
= control target key end

     0   :  { %v2329_v2 = vmov 0.0   ;;  %vm94_vm0 = vcmask 523264   ;;  %s2983_s0 = inlined_call_operand.vmem [shape: f32[18,8,64], index: 0, kind: input, shape index: {}]   ;;  %s2984_s1 = inlined_call_operand.vmem [shape: bf16[3,64,128], index: 1, kind: input, shape index: {}]   ;;  %s2985_s2 = inlined_call_operand.vmem [shape: f32[1,128], index: 2, kind: input, shape index: {}]   ;;  %s2986_s3 = inlined_call_operand.vmem [shape: bf16[3,128,128], index: 3, kind: input, shape index: {}]   ;;  %s2987_s4 = inlined_call_operand.vmem [shape: f32[1,128], index: 4, kind: input, shape index: {}]   ;;  %s2988_s5 = inlined_call_operand.vmem [shape: bf16[512,128], index: 5, kind: input, shape index: {}]   ;;  %s2989_s6 = inlined_call_operand.vmem [shape: f32[1,128], index: 6, kind: input, shape index: {}]   ;;  %s2990_s7 = inlined_call_operand.hbm [shape: f32[8,128], index: 7, kind: output, shape index: {}]  }
   0x1   :  { %v2237_v0 = vld [vmem:[%s2984_s1 + $0x20] sm:$0xff]   ;;  %v2238_v1 = vld [vmem:[%s2984_s1 + $0x28] sm:$0xff]   ;;  %1918 = vmatprep.subr.bf16.mxu1 %v2329_v2  ;;  %v2239_v3 = vld [vmem:[%s2984_s1 + $0x30] sm:$0xff]  }
   0x2   :  { %1870 = vmatprep.subr.bf16.mxu0 %v2237_v0  ;;  %v1564_v4 = vld [vmem:[%s2983_s0 + $0x48] sm:$0xff]  ;;  %v1565_v5 = vld [vmem:[%s2983_s0 + $0x50] sm:$0xff]  ;;  %v2240_v7 = vld [vmem:[%s2984_s1 + $0x38] sm:$0xff]  }
   0x3   :  { %1871 = vmatpush3.bf16.msra.mxu0 %v2237_v0  ;;  %v57_v6 = vpack.c.bf16 %v1565_v5, %v1564_v4  ;;  %v1566_v8 = vld [vmem:[%s2983_s0 + $0x58] sm:$0xff]  ;;  %v1567_v9 = vld [vmem:[%s2983_s0 + $0x60] sm:$0xff]  ;;  %v1568_v11 = vld [vmem:[%s2983_s0 + $0x68] sm:$0xff] }
   0x4   :  { %1872 = vmatprep.subr.bf16.mxu0 %v2238_v1  ;;  %v2241_v10 = vld [vmem:[%s2984_s1] sm:$0xff]   ;;  %v1569_v12 = vld [vmem:[%s2983_s0 + $0x70] sm:$0xff]  ;;  %v58_v13 = vpack.c.bf16 %v1567_v9, %v1566_v8  ;;  %v2242_v15 = vld [vmem:[%s2984_s1 + $0x8] sm:$0xff]  }
   0x5   :  { %1878 = vmatprep.mubr.msk.bf16.mxu0 %vm94_vm0, %v57_v6  ;;  %v59_v14 = vpack.c.bf16 %v1569_v12, %v1568_v11  ;;  %v1570_v16 = vld [vmem:[%s2983_s0 + $0x78] sm:$0xff]  ;;  %v1571_v17 = vld [vmem:[%s2983_s0 + $0x80] sm:$0xff]  ;;  %v2243_v18 = vld [vmem:[%s2984_s1 + $0x10] sm:$0xff]  }
   0x6   :  { %v28_v19 = vld [vmem:[%s2983_s0] sm:$0xff]  ;;  %v29_v21 = vld [vmem:[%s2983_s0 + $0x8] sm:$0xff]  ;;  %v60_v23 = vpack.c.bf16 %v1571_v17, %v1570_v16  ;;  %v2244_v25 = vld [vmem:[%s2984_s1 + $0x18] sm:$0xff]  }
   0x7   :  { %1873 = vmatpush3.bf16.msra.mxu0 %v2238_v1  ;;  %v2427_v20 = vld [vmem:[%s2986_s3 + $0x80] sm:$0xff]   ;;  %v2436_v22 = vld [vmem:[%s2986_s3 + $0x88] sm:$0xff]   ;;  %v36_v24 = vpack.c.bf16 %v29_v21, %v28_v19  ;;  %v30_v26 = vld [vmem:[%s2983_s0 + $0x10] sm:$0xff] }
   0x8   :  { %1874 = vmatprep.subr.bf16.mxu0 %v2239_v3  ;;  %1919 = vmatpush3.bf16.msra.mxu1 %v2427_v20  ;;  %v31_v27 = vld [vmem:[%s2983_s0 + $0x18] sm:$0xff]  ;;  %v2452_v28 = vld [vmem:[%s2986_s3 + $0x90] sm:$0xff]   ;;  %v2245_v29 = vld [vmem:[%s2984_s1 + $0x40] sm:$0xff]   ;;  %v282_v42 = vpack.c.bf16 %v30_v26, %v29_v21 }
   0x9   :  { %1920 = vmatprep.subr.bf16.mxu1 %v2329_v2  ;;  %v32_v30 = vld [vmem:[%s2983_s0 + $0x20] sm:$0xff]  ;;  %v33_v31 = vld [vmem:[%s2983_s0 + $0x28] sm:$0xff]  ;;  %v2469_v32 = vld [vmem:[%s2986_s3 + $0x98] sm:$0xff]   ;;  %v37_v33 = vpack.c.bf16 %v31_v27, %v30_v26 }
   0xa   :  { %v2246_v34 = vld [vmem:[%s2984_s1 + $0x48] sm:$0xff]   ;;  %v38_v35 = vpack.c.bf16 %v33_v31, %v32_v30  ;;  %v2479_v36 = vld [vmem:[%s2986_s3 + $0xa0] sm:$0xff]   ;;  %v34_v37 = vld [vmem:[%s2983_s0 + $0x30] sm:$0xff]  ;;  %v283_v44 = vpack.c.bf16 %v32_v30, %v31_v27 }
   0xb   :  { %1875 = vmatpush3.bf16.msra.mxu0 %v2239_v3  ;;  %v35_v38 = vld [vmem:[%s2983_s0 + $0x38] sm:$0xff]  ;;  %v2247_v39 = vld [vmem:[%s2984_s1 + $0x50] sm:$0xff]   ;;  %v2504_v43 = vld [vmem:[%s2986_s3 + $0x40] sm:$0xff]   ;;  %v284_v45 = vpack.c.bf16 %v34_v37, %v33_v31 }
   0xc   :  { %1876 = vmatprep.subr.bf16.mxu0 %v2240_v7  ;;  %1921 = vmatpush3.bf16.msra.mxu1 %v2436_v22  ;;  %v39_v40 = vpack.c.bf16 %v35_v38, %v34_v37  ;;  %v2248_v41 = vld [vmem:[%s2984_s1 + $0x58] sm:$0xff]   ;;  %v1603_v46 = vld [vmem:[%s2983_s0 + $0x40] sm:$0xff]  ;;  %v2513_v47 = vld [vmem:[%s2986_s3 + $0x48] sm:$0xff]  }
   0xd   :  { %1922 = vmatprep.subr.bf16.mxu1 %v2329_v2  ;;  %v2522_v48 = vld [vmem:[%s2986_s3 + $0x50] sm:$0xff]   ;;  %v285_v49 = vpack.c.bf16 %v1603_v46, %v35_v38 }
   0xf   :  { %1877 = vmatpush3.bf16.msra.mxu0 %v2240_v7 }
  0x10   :  { %1886 = vmatprep.subr.bf16.mxu0 %v2241_v10  ;;  %1923 = vmatpush3.bf16.msra.mxu1 %v2452_v28 }
  0x11   :  { %1924 = vmatprep.subr.bf16.mxu1 %v2329_v2 }
  0x12   :  { %1879 = vmatmul.mubr.msk.bf16.vlgmr.msra.gmra.mrb[0].mxu0 %vm94_vm0, %v58_v13 }
  0x13   :  { %1887 = vmatpush3.bf16.msra.mxu0 %v2241_v10  ;;  %1882 = vmatprep.mubr.msk.bf16.mxu0 %vm94_vm0, %v59_v14 }
  0x14   :  { %1888 = vmatprep.subr.bf16.mxu0 %v2242_v15  ;;  %1925 = vmatpush3.bf16.msra.mxu1 %v2469_v32 }
  0x15   :  { %1926 = vmatprep.subr.bf16.mxu1 %v2329_v2 }
  0x17   :  { %1889 = vmatpush3.bf16.msra.mxu0 %v2242_v15 }
  0x18   :  { %1890 = vmatprep.subr.bf16.mxu0 %v2243_v18  ;;  %1927 = vmatpush3.bf16.msra.mxu1 %v2479_v36 }
  0x19   :  { %1928 = vmatprep.subr.bf16.mxu1 %v2329_v2 }
  0x1a   :  { %1883 = vmatmul.mubr.msk.bf16.gmra.mrb[4].mxu0 %vm94_vm0, %v60_v23 }
  0x1b   :  { %1891 = vmatpush3.bf16.msra.mxu0 %v2243_v18  ;;  %1894 = vmatprep.mubr.msk.bf16.mxu0 %vm94_vm0, %v36_v24 }
  0x1c   :  { %1892 = vmatprep.subr.bf16.mxu0 %v2244_v25 }
  0x1f   :  { %1893 = vmatpush3.bf16.msra.mxu0 %v2244_v25 }
  0x20   :  { %1902 = vmatprep.subr.bf16.mxu0 %v2245_v29 }
  0x22   :  { %1895 = vmatmul.mubr.msk.bf16.vlgmr.msra.gmra.mrb[0].mxu0 %vm94_vm0, %v37_v33 }
  0x23   :  { %1903 = vmatpush3.bf16.msra.mxu0 %v2245_v29  ;;  %1898 = vmatprep.mubr.msk.bf16.mxu0 %vm94_vm0, %v38_v35 }
  0x24   :  { %1904 = vmatprep.subr.bf16.mxu0 %v2246_v34 }
  0x27   :  { %1905 = vmatpush3.bf16.msra.mxu0 %v2246_v34 }
  0x28   :  { %1906 = vmatprep.subr.bf16.mxu0 %v2247_v39 }
  0x2a   :  { %1899 = vmatmul.mubr.msk.bf16.gmra.mrb[4].mxu0 %vm94_vm0, %v39_v40 }
  0x2b   :  { %1907 = vmatpush3.bf16.msra.mxu0 %v2247_v39  ;;  %1910 = vmatprep.mubr.msk.bf16.mxu0 %vm94_vm0, %v282_v42 }
  0x2c   :  { %1908 = vmatprep.subr.bf16.mxu0 %v2248_v41 }
  0x2f   :  { %1909 = vmatpush3.bf16.msra.mxu0 %v2248_v41 }
  0x30   :  { %1958 = vmatprep.subr.bf16.mxu0 %v2329_v2 }
  0x32   :  { %1911 = vmatmul.mubr.msk.bf16.vlgmr.msra.gmra.mrb[0].mxu0 %vm94_vm0, %v283_v44 }
  0x33   :  { %1914 = vmatprep.mubr.msk.bf16.mxu0 %vm94_vm0, %v284_v45  ;;  %1959 = vmatpush3.bf16.msra.mxu0 %v2504_v43 }
  0x34   :  { %1960 = vmatprep.subr.bf16.mxu0 %v2329_v2 }
  0x37   :  { %1961 = vmatpush3.bf16.msra.mxu0 %v2513_v47 }
  0x38   :  { %1962 = vmatprep.subr.bf16.mxu0 %v2329_v2 }
  0x3a   :  { %1915 = vmatmul.mubr.msk.bf16.gmra.mrb[4].mxu0 %vm94_vm0, %v285_v49 }
  0x3b   :  { %12 = vsyncpa [#allocation3], 0  ;;  %1963 = vmatpush3.bf16.msra.mxu0 %v2522_v48  ;;  %v2531_v50 = vld [vmem:[%s2986_s3 + $0x58] sm:$0xff]   ;;  %v2538_v51 = vld [vmem:[%s2986_s3 + $0x60] sm:$0xff]   ;;  %vm2330_vm1 = vmmov 0  }
  0x3c   :  { %1964 = vmatprep.subr.bf16.mxu0 %v2329_v2  ;;  %v2545_v52 = vld [vmem:[%s2986_s3 + $0x68] sm:$0xff]   ;;  %v2558_v54 = vld [vmem:[%s2986_s3 + $0x70] sm:$0xff]   ;;  %v2572_v56 = vld [vmem:[%s2986_s3 + $0x78] sm:$0xff]   ;;  %1974 = vmatprep.mubr.msk.bf16.mxu0 %vm2330_vm1, %v2329_v2 }
  0x3d   :  { %v2553_v53 = vld [vmem:[%s2986_s3 + $0xa8] sm:$0xff]   ;;  %v2566_v55 = vld [vmem:[%s2986_s3 + $0xb0] sm:$0xff]   ;;  %v2580_v57 = vld [vmem:[%s2986_s3 + $0xb8] sm:$0xff]   ;;  %1934 = vmatprep.mubr.msk.bf16.mxu1 %vm2330_vm1, %v2329_v2 }
  0x3e   :  { %1929 = vmatpush3.bf16.msra.mxu1 %v2553_v53  ;;  %v1620_v58 = vld [vmem:[%s2985_s2] ss:$0 sm:$0xff]  ;;  %v2655_v40 = vld [vmem:[%s2986_s3 + $0x8] sm:$0xff]   ;;  %v2664_v41 = vld [vmem:[%s2986_s3 + $0x10] sm:$0xff]   ;;  %s2331_s2 = smov [#allocation2]  }
  0x3f   :  { %1965 = vmatpush3.bf16.msra.mxu0 %v2531_v50  ;;  %1930 = vmatprep.subr.bf16.mxu1 %v2329_v2  ;;  %v2645_v39 = vld [vmem:[%s2986_s3] sm:$0xff]   ;;  %v2671_v42 = vld [vmem:[%s2986_s3 + $0x18] sm:$0xff]   ;;  %v2685_v45 = vld [vmem:[%s2986_s3 + $0x28] sm:$0xff]   ;;  %s1556_s22 = sshll.u32 %s2331_s2, 4  ;;  %s1557_s22 = int_to_ptr.vmem [resolvable:$true] %s1556_s22 }
  0x40   :  { %1966 = vmatprep.subr.bf16.mxu0 %v2329_v2  ;;  %v2678_v44 = vld [vmem:[%s2986_s3 + $0x20] sm:$0xff]   ;;  %v2692_v46 = vld [vmem:[%s2986_s3 + $0x30] sm:$0xff]   ;;  %v2699_v49 = vld [vmem:[%s2986_s3 + $0x38] sm:$0xff]   ;;  %s2305_s1 = scalar_lea.vmem %s1557_s22, 128  ;;  %p2310_p1 = scmp.lt.s32.totalorder %s1557_s22, %s1557_s22 }
  0x41   :  { %p2306_p0 = scmp.ne.s32.totalorder %s1557_s22, %s2305_s1  ;;  %p2311_p2 = scmp.lt.s32.totalorder %s2305_s1, %s2305_s1 }
  0x42   :  { %1931 = vmatpush3.bf16.msra.mxu1 %v2566_v55 }
  0x43   :  { %1967 = vmatpush3.bf16.msra.mxu0 %v2538_v51  ;;  %1932 = vmatprep.subr.bf16.mxu1 %v2329_v2  ;;  %p2312_p3 = por %p2311_p2, %p2310_p1 }
  0x44   :  { %1968 = vmatprep.subr.bf16.mxu0 %v2329_v2 }
  0x45   :  { %p2313_p4 = pnand %p2312_p3, %p2306_p0 }
  0x46   :  { %1933 = vmatpush3.bf16.msra.mxu1 %v2580_v57 }
  0x47   :  { %1969 = vmatpush3.bf16.msra.mxu0 %v2545_v52  ;;  %1938 = vmatprep.subr.bf16.mxu1 %v2329_v2 }
  0x48   :  { %1970 = vmatprep.subr.bf16.mxu0 %v2329_v2 }
  0x4b   :  { %1971 = vmatpush3.bf16.msra.mxu0 %v2558_v54 }
  0x4c   :  { %1972 = vmatprep.subr.bf16.mxu0 %v2329_v2 }
  0x4f   :  { %1973 = vmatpush3.bf16.msra.mxu0 %v2572_v56 }
  0x50   :  { %1998 = vmatprep.subr.bf16.mxu0 %v2329_v2 }
 0x105   :  { %v1912_v59 = vpop.f32.mrb[0].mxu0 }
 0x106   :  { %v413_v60 = vadd.f32 %v1912_v59, %v1620_v58  ;;  %v365_v61 = vpop.f32.mrb[1].mxu0  ;;  %v2274_v59 = vld [vmem:[%s2988_s5 + $0x8] sm:$0xff]  }
 0x107   :  { %v411_v62 = vadd.f32 %v1620_v58, %v365_v61  ;;  %v1913_v63 = vpop.f32.mrb[2].mxu0  ;;  %v2276_v61 = vld [vmem:[%s2988_s5 + $0x18] sm:$0xff]  }
 0x108   :  { %v429_v0 = vmul.f32 0.01, %v413_v60  ;;  %v414_v1 = vadd.f32 %v1913_v63, %v1620_v58  ;;  %v368_v3 = vpop.f32.mrb[3].mxu0  ;;  %vm421_vm2 = vcmp.ge.f32.partialorder %v413_v60, 0.0  ;;  %v2278_v63 = vld [vmem:[%s2988_s5 + $0x28] sm:$0xff]  }
 0x109   :  { %v427_v4 = vmul.f32 0.01, %v411_v62  ;;  %v412_v5 = vadd.f32 %v1620_v58, %v368_v3  ;;  %vm419_vm3 = vcmp.ge.f32.partialorder %v411_v62, 0.0  ;;  %v2281_v3 = vld [vmem:[%s2988_s5 + $0x40] sm:$0xff]  }
 0x10a   :  { %vm422_vm4 = vcmp.ge.f32.partialorder %v414_v1, 0.0  ;;  %v430_v6 = vmul.f32 0.01, %v414_v1  ;;  %v437_v8 = vsel %vm421_vm2, %v413_v60, %v429_v0  ;;  %v2275_v60 = vld [vmem:[%s2988_s5 + $0x10] sm:$0xff]  }
 0x10b   :  { %vm420_vm5 = vcmp.ge.f32.partialorder %v412_v5, 0.0  ;;  %v428_v7 = vmul.f32 0.01, %v412_v5  ;;  %v435_v10 = vsel %vm419_vm3, %v411_v62, %v427_v4  ;;  %v2277_v62 = vld [vmem:[%s2988_s5 + $0x20] sm:$0xff]   ;;  %v2279_v0 = vld [vmem:[%s2988_s5 + $0x30] sm:$0xff]   ;;  %v2282_v4 = vld [vmem:[%s2988_s5 + $0x48] sm:$0xff]  }
 0x10c   :  { %v438_v9 = vsel %vm422_vm4, %v414_v1, %v430_v6  ;;  %v2280_v1 = vld [vmem:[%s2988_s5 + $0x38] sm:$0xff]  }
 0x10d   :  { %v2592_v11 = vpack.c.bf16 %v438_v9, %v437_v8  ;;  %v436_v12 = vsel %vm420_vm5, %v412_v5, %v428_v7  ;;  %v1916_v13 = vpop.f32.mrb[4].mxu0  ;;  %v2283_v5 = vld [vmem:[%s2988_s5 + $0x50] sm:$0xff]   ;;  %v2284_v6 = vld [vmem:[%s2988_s5 + $0x58] sm:$0xff]   ;;  %v2285_v7 = vld [vmem:[%s2988_s5 + $0x60] sm:$0xff]  }
 0x10e   :  { %v417_v14 = vadd.f32 %v1916_v13, %v1620_v58  ;;  %v381_v15 = vpop.f32.mrb[5].mxu0  ;;  %v2594_v16 = vpack.c.bf16 %v436_v12, %v435_v10  ;;  %v2286_v8 = vld [vmem:[%s2988_s5 + $0x68] sm:$0xff]   ;;  %v2287_v9 = vld [vmem:[%s2988_s5 + $0x70] sm:$0xff]   ;;  %v2288_v10 = vld [vmem:[%s2988_s5 + $0x78] sm:$0xff]  }
 0x10f   :  { %v415_v17 = vadd.f32 %v1620_v58, %v381_v15  ;;  %v1917_v18 = vpop.f32.mrb[6].mxu0  ;;  %1975 = vmatmul.mubr.bf16.vlgmr.msra.gmra.mrb[8].mxu0 %v2592_v11  ;;  %v833_v38 = vrot.slane %v2592_v11, 4 }
 0x110   :  { %v433_v19 = vmul.f32 0.01, %v417_v14  ;;  %v418_v21 = vadd.f32 %v1917_v18, %v1620_v58  ;;  %1999 = vmatpush3.bf16.msra.mxu0 %v2427_v20  ;;  %v384_v23 = vpop.f32.mrb[7].mxu0  ;;  %v498_v24 = vrot.slane %v2594_v16, 4  ;;  %2014 = vmatprep.mubr.msk.bf16.mxu0 %vm2330_vm1, %v2329_v2  ;;  %vm425_vm6 = vcmp.ge.f32.partialorder %v417_v14, 0.0 }
 0x111   :  { %v431_v25 = vmul.f32 0.01, %v415_v17  ;;  %v416_v26 = vadd.f32 %v1620_v58, %v384_v23  ;;  %2000 = vmatprep.subr.bf16.mxu0 %v2329_v2  ;;  %vm423_vm7 = vcmp.ge.f32.partialorder %v415_v17, 0.0  ;;  %v2273_v58 = vld [vmem:[%s2988_s5] sm:$0xff]  }
 0x112   :  { %vm426_vm8 = vcmp.ge.f32.partialorder %v418_v21, 0.0  ;;  %v434_v27 = vmul.f32 0.01, %v418_v21  ;;  %1935 = vmatmul.mubr.bf16.vlgmr.msra.gmra.mrb[0].mxu1 %v498_v24  ;;  %v441_v30 = vsel %vm425_vm6, %v417_v14, %v433_v19 }
 0x113   :  { %vm424_vm9 = vcmp.ge.f32.partialorder %v416_v26, 0.0  ;;  %v432_v29 = vmul.f32 0.01, %v416_v26  ;;  %1939 = vmatpush3.bf16.msra.mxu1 %v2504_v43  ;;  %1954 = vmatprep.mubr.msk.bf16.mxu1 %vm2330_vm1, %v2329_v2  ;;  %v439_v33 = vsel %vm423_vm7, %v415_v17, %v431_v25 }
 0x114   :  { %v442_v31 = vsel %vm426_vm8, %v418_v21, %v434_v27  ;;  %2001 = vmatpush3.bf16.msra.mxu0 %v2436_v22  ;;  %1940 = vmatprep.subr.bf16.mxu1 %v2329_v2 }
 0x115   :  { %v2609_v34 = vpack.c.bf16 %v442_v31, %v441_v30  ;;  %v440_v35 = vsel %vm424_vm9, %v416_v26, %v432_v29  ;;  %2002 = vmatprep.subr.bf16.mxu0 %v2329_v2  ;;  %v2775_v26 = vld [vmem:[%s2987_s4] ss:$0 sm:$0xff] }
 0x116   :  { %v2612_v37 = vpack.c.bf16 %v440_v35, %v439_v33 }
 0x117   :  { %1941 = vmatpush3.bf16.msra.mxu1 %v2513_v47 }
 0x118   :  { %2003 = vmatpush3.bf16.msra.mxu0 %v2452_v28  ;;  %1942 = vmatprep.subr.bf16.mxu1 %v2329_v2  ;;  %v1154_v11 = vrot.slane %v2612_v37, 4 }
 0x119   :  { %2004 = vmatprep.subr.bf16.mxu0 %v2329_v2 }
 0x11b   :  { %1943 = vmatpush3.bf16.msra.mxu1 %v2522_v48 }
 0x11c   :  { %2005 = vmatpush3.bf16.msra.mxu0 %v2469_v32  ;;  %1944 = vmatprep.subr.bf16.mxu1 %v2329_v2 }
 0x11d   :  { %2006 = vmatprep.subr.bf16.mxu0 %v2329_v2 }
 0x11f   :  { %1945 = vmatpush3.bf16.msra.mxu1 %v2531_v50 }
 0x120   :  { %2007 = vmatpush3.bf16.msra.mxu0 %v2479_v36  ;;  %1946 = vmatprep.subr.bf16.mxu1 %v2329_v2 }
 0x121   :  { %2008 = vmatprep.subr.bf16.mxu0 %v2329_v2 }
 0x123   :  { %1947 = vmatpush3.bf16.msra.mxu1 %v2538_v51 }
 0x124   :  { %2009 = vmatpush3.bf16.msra.mxu0 %v2553_v53  ;;  %1948 = vmatprep.subr.bf16.mxu1 %v2329_v2 }
 0x125   :  { %2010 = vmatprep.subr.bf16.mxu0 %v2329_v2 }
 0x127   :  { %1949 = vmatpush3.bf16.msra.mxu1 %v2545_v52 }
 0x128   :  { %2011 = vmatpush3.bf16.msra.mxu0 %v2566_v55  ;;  %1950 = vmatprep.subr.bf16.mxu1 %v2329_v2 }
 0x129   :  { %2012 = vmatprep.subr.bf16.mxu0 %v2329_v2 }
 0x12b   :  { %1951 = vmatpush3.bf16.msra.mxu1 %v2558_v54 }
 0x12c   :  { %2013 = vmatpush3.bf16.msra.mxu0 %v2580_v57  ;;  %1952 = vmatprep.subr.bf16.mxu1 %v2329_v2 }
 0x12d   :  { %2038 = vmatprep.subr.bf16.mxu0 %v2329_v2 }
 0x12f   :  { %1953 = vmatpush3.bf16.msra.mxu1 %v2572_v56  ;;  %2015 = vmatmul.mubr.bf16.vlgmr.msra.gmra.mrb[12].mxu0 %v833_v38 }
 0x130   :  { %1978 = vmatprep.subr.bf16.mxu1 %v2329_v2  ;;  %2054 = vmatprep.mubr.msk.bf16.mxu0 %vm2330_vm1, %v2329_v2 }
 0x131   :  { %2039 = vmatpush3.bf16.msra.mxu0 %v2273_v58 }
 0x132   :  { %1955 = vmatmul.mubr.bf16.vlgmr.msra.gmra.mrb[4].mxu1 %v2594_v16  ;;  %2040 = vmatprep.subr.bf16.mxu0 %v2329_v2 }
 0x133   :  { %1979 = vmatpush3.bf16.msra.mxu1 %v2645_v39  ;;  %1994 = vmatprep.mubr.msk.bf16.mxu1 %vm2330_vm1, %v2329_v2 }
 0x134   :  { %1980 = vmatprep.subr.bf16.mxu1 %v2329_v2 }
 0x135   :  { %2041 = vmatpush3.bf16.msra.mxu0 %v2274_v59 }
 0x136   :  { %2042 = vmatprep.subr.bf16.mxu0 %v2329_v2 }
 0x137   :  { %1981 = vmatpush3.bf16.msra.mxu1 %v2655_v40 }
 0x138   :  { %1982 = vmatprep.subr.bf16.mxu1 %v2329_v2 }
 0x139   :  { %2043 = vmatpush3.bf16.msra.mxu0 %v2275_v60 }
 0x13a   :  { %2044 = vmatprep.subr.bf16.mxu0 %v2329_v2 }
 0x13b   :  { %1983 = vmatpush3.bf16.msra.mxu1 %v2664_v41 }
 0x13c   :  { %1984 = vmatprep.subr.bf16.mxu1 %v2329_v2 }
 0x13d   :  { %2045 = vmatpush3.bf16.msra.mxu0 %v2276_v61 }
 0x13e   :  { %2046 = vmatprep.subr.bf16.mxu0 %v2329_v2 }
 0x13f   :  { %1985 = vmatpush3.bf16.msra.mxu1 %v2671_v42 }
 0x140   :  { %1986 = vmatprep.subr.bf16.mxu1 %v2329_v2 }
 0x141   :  { %2047 = vmatpush3.bf16.msra.mxu0 %v2277_v62 }
 0x142   :  { %2048 = vmatprep.subr.bf16.mxu0 %v2329_v2 }
 0x143   :  { %1987 = vmatpush3.bf16.msra.mxu1 %v2678_v44 }
 0x144   :  { %1988 = vmatprep.subr.bf16.mxu1 %v2329_v2 }
 0x145   :  { %2049 = vmatpush3.bf16.msra.mxu0 %v2278_v63 }
 0x146   :  { %2050 = vmatprep.subr.bf16.mxu0 %v2329_v2 }
 0x147   :  { %1989 = vmatpush3.bf16.msra.mxu1 %v2685_v45 }
 0x148   :  { %1990 = vmatprep.subr.bf16.mxu1 %v2329_v2 }
 0x149   :  { %2051 = vmatpush3.bf16.msra.mxu0 %v2279_v0 }
 0x14a   :  { %2052 = vmatprep.subr.bf16.mxu0 %v2329_v2 }
 0x14b   :  { %1991 = vmatpush3.bf16.msra.mxu1 %v2692_v46 }
 0x14c   :  { %1992 = vmatprep.subr.bf16.mxu1 %v2329_v2 }
 0x14d   :  { %2053 = vmatpush3.bf16.msra.mxu0 %v2280_v1 }
 0x14e   :  { %2078 = vmatprep.subr.bf16.mxu0 %v2329_v2 }
 0x14f   :  { %1993 = vmatpush3.bf16.msra.mxu1 %v2699_v49 }
 0x150   :  { %2018 = vmatprep.subr.bf16.mxu1 %v2329_v2 }
 0x152   :  { %1995 = vmatmul.mubr.bf16.vlgmr.msra.gmra.mrb[8].mxu1 %v498_v24 }
 0x153   :  { %2034 = vmatprep.mubr.msk.bf16.mxu1 %vm2330_vm1, %v2329_v2  ;;  %2019 = vmatpush3.bf16.msra.mxu1 %v2281_v3 }
 0x154   :  { %2020 = vmatprep.subr.bf16.mxu1 %v2329_v2 }
 0x157   :  { %2021 = vmatpush3.bf16.msra.mxu1 %v2282_v4 }
 0x158   :  { %2022 = vmatprep.subr.bf16.mxu1 %v2329_v2 }
 0x15b   :  { %2023 = vmatpush3.bf16.msra.mxu1 %v2283_v5 }
 0x15c   :  { %2024 = vmatprep.subr.bf16.mxu1 %v2329_v2 }
 0x15f   :  { %2025 = vmatpush3.bf16.msra.mxu1 %v2284_v6 }
 0x160   :  { %2026 = vmatprep.subr.bf16.mxu1 %v2329_v2 }
 0x163   :  { %2027 = vmatpush3.bf16.msra.mxu1 %v2285_v7 }
 0x164   :  { %2028 = vmatprep.subr.bf16.mxu1 %v2329_v2 }
 0x167   :  { %2029 = vmatpush3.bf16.msra.mxu1 %v2286_v8 }
 0x168   :  { %2030 = vmatprep.subr.bf16.mxu1 %v2329_v2 }
 0x16b   :  { %2031 = vmatpush3.bf16.msra.mxu1 %v2287_v9 }
 0x16c   :  { %2032 = vmatprep.subr.bf16.mxu1 %v2329_v2 }
 0x16f   :  { %2033 = vmatpush3.bf16.msra.mxu1 %v2288_v10 }
 0x170   :  { %2058 = vmatprep.subr.bf16.mxu1 %v2329_v2 }
 0x1e2   :  { %v738_v12 = vpop.f32.mrb[8].mxu0 }
 0x1e3   :  { %v1976_v13 = vpop.f32.mrb[9].mxu0 }
 0x1e4   :  { %v741_v14 = vpop.f32.mrb[10].mxu0 }
 0x1e5   :  { %v582_v15 = vpop.f32.mrb[0].mxu1  ;;  %v1977_v16 = vpop.f32.mrb[11].mxu0 }
 0x1e6   :  { %v1936_v17 = vpop.f32.mrb[1].mxu1 }
 0x1e7   :  { %v585_v18 = vpop.f32.mrb[2].mxu1 }
 0x1e8   :  { %v1937_v19 = vpop.f32.mrb[3].mxu1 }
 0x202   :  { %v869_v21 = vpop.f32.mrb[12].mxu0 }
 0x203   :  { %v2016_v23 = vpop.f32.mrb[13].mxu0 }
 0x204   :  { %v872_v24 = vpop.f32.mrb[14].mxu0 }
 0x205   :  { %v670_v25 = vpop.f32.mrb[4].mxu1  ;;  %v2017_v27 = vpop.f32.mrb[15].mxu0 }
 0x206   :  { %v671_v29 = vadd.f32 %v670_v25, %v582_v15  ;;  %v1956_v30 = vpop.f32.mrb[5].mxu1 }
 0x207   :  { %v673_v31 = vpop.f32.mrb[6].mxu1 }
 0x208   :  { %v683_v33 = vadd.f32 %v2775_v26, %v671_v29  ;;  %v1957_v35 = vpop.f32.mrb[7].mxu1 }
 0x209   :  { %v2300_v35 = vld [vmem:[%s2988_s5 + $0xd8] sm:$0xff]  }
 0x20a   :  { %vm684_vm10 = vcmp.ge.f32.partialorder %v683_v33, 0.0  ;;  %v685_v58 = vmul.f32 0.01, %v683_v33 }
 0x20c   :  { %v686_v59 = vsel %vm684_vm10, %v683_v33, %v685_v58  ;;  %v2301_v58 = vld [vmem:[%s2988_s5 + $0xe0] sm:$0xff]  }
 0x20d   :  { %v687_v60 = vpack.c.bf16 %v686_v59, %v686_v59  ;;  %v2302_v59 = vld [vmem:[%s2988_s5 + $0xe8] sm:$0xff]  }
 0x20f   :  { %2055 = vmatmul.mubr.bf16.vlgmr.msra.gmra.mrb[16].mxu0 %v687_v60  ;;  %v2303_v60 = vld [vmem:[%s2988_s5 + $0xf0] sm:$0xff]  }
 0x210   :  { %2079 = vmatpush3.bf16.msra.mxu0 %v2645_v39  ;;  %2094 = vmatprep.mubr.msk.bf16.mxu0 %vm2330_vm1, %v2329_v2 }
 0x211   :  { %2080 = vmatprep.subr.bf16.mxu0 %v2329_v2 }
 0x214   :  { %2081 = vmatpush3.bf16.msra.mxu0 %v2655_v40 }
 0x215   :  { %2082 = vmatprep.subr.bf16.mxu0 %v2329_v2 }
 0x218   :  { %2083 = vmatpush3.bf16.msra.mxu0 %v2664_v41 }
 0x219   :  { %2084 = vmatprep.subr.bf16.mxu0 %v2329_v2 }
 0x21c   :  { %2085 = vmatpush3.bf16.msra.mxu0 %v2671_v42 }
 0x21d   :  { %2086 = vmatprep.subr.bf16.mxu0 %v2329_v2 }
 0x220   :  { %2087 = vmatpush3.bf16.msra.mxu0 %v2678_v44 }
 0x221   :  { %2088 = vmatprep.subr.bf16.mxu0 %v2329_v2 }
 0x224   :  { %2089 = vmatpush3.bf16.msra.mxu0 %v2685_v45 }
 0x225   :  { %v826_v61 = vpop.f32.mrb[8].mxu1  ;;  %2090 = vmatprep.subr.bf16.mxu0 %v2329_v2 }
 0x226   :  { %v827_v62 = vadd.f32 %v826_v61, %v738_v12  ;;  %v1996_v63 = vpop.f32.mrb[9].mxu1  ;;  %v2304_v61 = vld [vmem:[%s2988_s5 + $0xf8] sm:$0xff]  }
 0x227   :  { %v829_v0 = vpop.f32.mrb[10].mxu1 }
 0x228   :  { %v875_v1 = vadd.f32 %v869_v21, %v827_v62  ;;  %2091 = vmatpush3.bf16.msra.mxu0 %v2692_v46  ;;  %v1997_v3 = vpop.f32.mrb[11].mxu1 }
 0x229   :  { %2092 = vmatprep.subr.bf16.mxu0 %v2329_v2 }
 0x22a   :  { %v876_v4 = vadd.f32 %v2775_v26, %v875_v1 }
 0x22c   :  { %vm877_vm11 = vcmp.ge.f32.partialorder %v876_v4, 0.0  ;;  %v878_v5 = vmul.f32 0.01, %v876_v4  ;;  %2093 = vmatpush3.bf16.msra.mxu0 %v2699_v49 }
 0x22d   :  { %2118 = vmatprep.subr.bf16.mxu0 %v2329_v2 }
 0x22e   :  { %v879_v6 = vsel %vm877_vm11, %v876_v4, %v878_v5 }
 0x22f   :  { %2095 = vmatmul.mubr.bf16.vlgmr.msra.gmra.mrb[20].mxu0 %v833_v38  ;;  %v880_v7 = vpack.c.bf16 %v879_v6, %v879_v6 }
 0x230   :  { %2134 = vmatprep.mubr.msk.bf16.mxu0 %vm2330_vm1, %v2329_v2 }
 0x231   :  { %2035 = vmatmul.mubr.bf16.vlgmr.msra.gmra.mrb[12].mxu1 %v880_v7 }
 0x232   :  { %2059 = vmatpush3.bf16.msra.mxu1 %v2504_v43  ;;  %2074 = vmatprep.mubr.msk.bf16.mxu1 %vm2330_vm1, %v2329_v2 }
 0x233   :  { %2060 = vmatprep.subr.bf16.mxu1 %v2329_v2 }
 0x236   :  { %2061 = vmatpush3.bf16.msra.mxu1 %v2513_v47 }
 0x237   :  { %2062 = vmatprep.subr.bf16.mxu1 %v2329_v2 }
 0x23a   :  { %2063 = vmatpush3.bf16.msra.mxu1 %v2522_v48 }
 0x23b   :  { %2064 = vmatprep.subr.bf16.mxu1 %v2329_v2 }
 0x23e   :  { %2065 = vmatpush3.bf16.msra.mxu1 %v2531_v50 }
 0x23f   :  { %2066 = vmatprep.subr.bf16.mxu1 %v2329_v2 }
 0x242   :  { %2067 = vmatpush3.bf16.msra.mxu1 %v2538_v51 }
 0x243   :  { %2068 = vmatprep.subr.bf16.mxu1 %v2329_v2 }
 0x246   :  { %2069 = vmatpush3.bf16.msra.mxu1 %v2545_v52 }
 0x247   :  { %2070 = vmatprep.subr.bf16.mxu1 %v2329_v2 }
 0x24a   :  { %2071 = vmatpush3.bf16.msra.mxu1 %v2558_v54 }
 0x24b   :  { %2072 = vmatprep.subr.bf16.mxu1 %v2329_v2 }
 0x24e   :  { %2073 = vmatpush3.bf16.msra.mxu1 %v2572_v56 }
 0x24f   :  { %2098 = vmatprep.subr.bf16.mxu1 %v2329_v2 }
 0x251   :  { %2075 = vmatmul.mubr.bf16.vlgmr.msra.gmra.mrb[16].mxu1 %v2612_v37  ;;  %v2299_v37 = vld [vmem:[%s2988_s5 + $0xd0] sm:$0xff]  }
 0x252   :  { %2099 = vmatpush3.bf16.msra.mxu1 %v2427_v20  ;;  %2114 = vmatprep.mubr.msk.bf16.mxu1 %vm2330_vm1, %v2329_v2 }
 0x253   :  { %2100 = vmatprep.subr.bf16.mxu1 %v2329_v2 }
 0x256   :  { %2101 = vmatpush3.bf16.msra.mxu1 %v2436_v22 }
 0x257   :  { %2102 = vmatprep.subr.bf16.mxu1 %v2329_v2 }
 0x25a   :  { %2103 = vmatpush3.bf16.msra.mxu1 %v2452_v28 }
 0x25b   :  { %2104 = vmatprep.subr.bf16.mxu1 %v2329_v2 }
 0x25e   :  { %2105 = vmatpush3.bf16.msra.mxu1 %v2469_v32 }
 0x25f   :  { %2106 = vmatprep.subr.bf16.mxu1 %v2329_v2 }
 0x262   :  { %2107 = vmatpush3.bf16.msra.mxu1 %v2479_v36 }
 0x263   :  { %2108 = vmatprep.subr.bf16.mxu1 %v2329_v2 }
 0x266   :  { %2109 = vmatpush3.bf16.msra.mxu1 %v2553_v53 }
 0x267   :  { %2110 = vmatprep.subr.bf16.mxu1 %v2329_v2 }
 0x26a   :  { %2111 = vmatpush3.bf16.msra.mxu1 %v2566_v55 }
 0x26b   :  { %2112 = vmatprep.subr.bf16.mxu1 %v2329_v2 }
 0x26e   :  { %2113 = vmatpush3.bf16.msra.mxu1 %v2580_v57 }
 0x26f   :  { %2138 = vmatprep.subr.bf16.mxu1 %v2329_v2 }
 0x271   :  { %2115 = vmatmul.mubr.bf16.vlgmr.msra.gmra.mrb[20].mxu1 %v1154_v11 }
 0x272   :  { %2139 = vmatpush3.bf16.msra.mxu1 %v2504_v43  ;;  %2154 = vmatprep.mubr.msk.bf16.mxu1 %vm2330_vm1, %v2329_v2  ;;  %v2293_v43 = vld [vmem:[%s2988_s5 + $0xa0] sm:$0xff]  }
 0x273   :  { %2140 = vmatprep.subr.bf16.mxu1 %v2329_v2 }
 0x276   :  { %2141 = vmatpush3.bf16.msra.mxu1 %v2513_v47  ;;  %v2294_v47 = vld [vmem:[%s2988_s5 + $0xa8] sm:$0xff]  }
 0x277   :  { %2142 = vmatprep.subr.bf16.mxu1 %v2329_v2 }
 0x27a   :  { %2143 = vmatpush3.bf16.msra.mxu1 %v2522_v48  ;;  %v2295_v48 = vld [vmem:[%s2988_s5 + $0xb0] sm:$0xff]  }
 0x27b   :  { %2144 = vmatprep.subr.bf16.mxu1 %v2329_v2 }
 0x27e   :  { %2145 = vmatpush3.bf16.msra.mxu1 %v2531_v50  ;;  %v2296_v50 = vld [vmem:[%s2988_s5 + $0xb8] sm:$0xff]  }
 0x27f   :  { %2146 = vmatprep.subr.bf16.mxu1 %v2329_v2 }
 0x282   :  { %2147 = vmatpush3.bf16.msra.mxu1 %v2538_v51 }
 0x283   :  { %2148 = vmatprep.subr.bf16.mxu1 %v2329_v2 }
 0x286   :  { %2149 = vmatpush3.bf16.msra.mxu1 %v2545_v52 }
 0x287   :  { %2150 = vmatprep.subr.bf16.mxu1 %v2329_v2 }
 0x28a   :  { %2151 = vmatpush3.bf16.msra.mxu1 %v2558_v54 }
 0x28b   :  { %2152 = vmatprep.subr.bf16.mxu1 %v2329_v2 }
 0x28e   :  { %2153 = vmatpush3.bf16.msra.mxu1 %v2572_v56 }
 0x28f   :  { %2178 = vmatprep.subr.bf16.mxu1 %v2329_v2 }
 0x291   :  { %2155 = vmatmul.mubr.bf16.vlgmr.msra.gmra.mrb[24].mxu1 %v2609_v34 }
 0x292   :  { %2179 = vmatpush3.bf16.msra.mxu1 %v2427_v20  ;;  %2194 = vmatprep.mubr.msk.bf16.mxu1 %vm2330_vm1, %v2329_v2  ;;  %v2289_v20 = vld [vmem:[%s2988_s5 + $0x80] sm:$0xff]  }
 0x293   :  { %2180 = vmatprep.subr.bf16.mxu1 %v2329_v2  ;;  %2119 = vmatpush3.bf16.msra.mxu0 %v2289_v20 }
 0x294   :  { %2120 = vmatprep.subr.bf16.mxu0 %v2329_v2 }
 0x296   :  { %2181 = vmatpush3.bf16.msra.mxu1 %v2436_v22  ;;  %v2290_v22 = vld [vmem:[%s2988_s5 + $0x88] sm:$0xff]  }
 0x297   :  { %2182 = vmatprep.subr.bf16.mxu1 %v2329_v2  ;;  %2121 = vmatpush3.bf16.msra.mxu0 %v2290_v22 }
 0x298   :  { %2122 = vmatprep.subr.bf16.mxu0 %v2329_v2 }
 0x29a   :  { %2183 = vmatpush3.bf16.msra.mxu1 %v2452_v28  ;;  %v2291_v28 = vld [vmem:[%s2988_s5 + $0x90] sm:$0xff]  }
 0x29b   :  { %2184 = vmatprep.subr.bf16.mxu1 %v2329_v2  ;;  %2123 = vmatpush3.bf16.msra.mxu0 %v2291_v28 }
 0x29c   :  { %2124 = vmatprep.subr.bf16.mxu0 %v2329_v2 }
 0x29e   :  { %2185 = vmatpush3.bf16.msra.mxu1 %v2469_v32  ;;  %v1388_v32 = vrot.slane %v2609_v34, 4 }
 0x29f   :  { %2186 = vmatprep.subr.bf16.mxu1 %v2329_v2 }
 0x2a2   :  { %2187 = vmatpush3.bf16.msra.mxu1 %v2479_v36  ;;  %v2292_v36 = vld [vmem:[%s2988_s5 + $0x98] sm:$0xff]  }
 0x2a3   :  { %2188 = vmatprep.subr.bf16.mxu1 %v2329_v2  ;;  %2125 = vmatpush3.bf16.msra.mxu0 %v2292_v36 }
 0x2a4   :  { %2126 = vmatprep.subr.bf16.mxu0 %v2329_v2 }
 0x2a6   :  { %2189 = vmatpush3.bf16.msra.mxu1 %v2553_v53 }
 0x2a7   :  { %2190 = vmatprep.subr.bf16.mxu1 %v2329_v2  ;;  %2127 = vmatpush3.bf16.msra.mxu0 %v2293_v43  ;;  %v1710_v43 = vld [vmem:[%s2989_s6] ss:$0 sm:$0xff] }
 0x2a8   :  { %2128 = vmatprep.subr.bf16.mxu0 %v2329_v2 }
 0x2aa   :  { %2191 = vmatpush3.bf16.msra.mxu1 %v2566_v55 }
 0x2ab   :  { %2192 = vmatprep.subr.bf16.mxu1 %v2329_v2  ;;  %2129 = vmatpush3.bf16.msra.mxu0 %v2294_v47 }
 0x2ac   :  { %2130 = vmatprep.subr.bf16.mxu0 %v2329_v2 }
 0x2ae   :  { %2193 = vmatpush3.bf16.msra.mxu1 %v2580_v57 }
 0x2af   :  { %2131 = vmatpush3.bf16.msra.mxu0 %v2295_v48 }
 0x2b0   :  { %2132 = vmatprep.subr.bf16.mxu0 %v2329_v2 }
 0x2b1   :  { %2195 = vmatmul.mubr.bf16.vlgmr.msra.gmra.mrb[28].mxu1 %v1388_v32 }
 0x2b3   :  { %2133 = vmatpush3.bf16.msra.mxu0 %v2296_v50 }
 0x2b4   :  { %2158 = vmatprep.subr.bf16.mxu0 %v2329_v2 }
 0x2e2   :  { %v1067_v51 = vpop.f32.mrb[16].mxu0 }
 0x2e3   :  { %v2056_v52 = vpop.f32.mrb[17].mxu0 }
 0x2e4   :  { %v1070_v53 = vpop.f32.mrb[18].mxu0 }
 0x2e5   :  { %v2057_v54 = vpop.f32.mrb[19].mxu0 }
 0x302   :  { %v1147_v55 = vpop.f32.mrb[20].mxu0 }
 0x303   :  { %v2096_v56 = vpop.f32.mrb[21].mxu0 }
 0x304   :  { %v1150_v57 = vpop.f32.mrb[22].mxu0  ;;  %v979_v34 = vpop.f32.mrb[12].mxu1 }
 0x305   :  { %v2910_v38 = vadd.f32 %v1067_v51, %v979_v34  ;;  %v2097_v8 = vpop.f32.mrb[23].mxu0  ;;  %v2036_v9 = vpop.f32.mrb[13].mxu1 }
 0x306   :  { %v982_v10 = vpop.f32.mrb[14].mxu1 }
 0x307   :  { %v2037_v12 = vpop.f32.mrb[15].mxu1 }
 0x324   :  { %v1107_v13 = vpop.f32.mrb[16].mxu1 }
 0x325   :  { %v1148_v14 = vadd.f32 %v1147_v55, %v1107_v13  ;;  %v2076_v15 = vpop.f32.mrb[17].mxu1 }
 0x326   :  { %v1110_v16 = vpop.f32.mrb[18].mxu1 }
 0x327   :  { %v2077_v17 = vpop.f32.mrb[19].mxu1 }
 0x344   :  { %v1190_v18 = vpop.f32.mrb[20].mxu1 }
 0x345   :  { %v1196_v19 = vadd.f32 %v1190_v18, %v1148_v14  ;;  %v2116_v21 = vpop.f32.mrb[21].mxu1 }
 0x346   :  { %v1193_v23 = vpop.f32.mrb[22].mxu1 }
 0x347   :  { %v1197_v24 = vadd.f32 %v2775_v26, %v1196_v19  ;;  %v2117_v25 = vpop.f32.mrb[23].mxu1 }
 0x349   :  { %vm1198_vm12 = vcmp.ge.f32.partialorder %v1197_v24, 0.0  ;;  %v1199_v27 = vmul.f32 0.01, %v1197_v24 }
 0x34b   :  { %v1200_v29 = vsel %vm1198_vm12, %v1197_v24, %v1199_v27 }
 0x34c   :  { %v1201_v30 = vpack.c.bf16 %v1200_v29, %v1200_v29 }
 0x34e   :  { %2135 = vmatmul.mubr.bf16.vlgmr.msra.gmra.mrb[24].mxu0 %v1201_v30 }
 0x34f   :  { %2159 = vmatpush3.bf16.msra.mxu0 %v2645_v39  ;;  %2174 = vmatprep.mubr.msk.bf16.mxu0 %vm2330_vm1, %v2329_v2 }
 0x350   :  { %2160 = vmatprep.subr.bf16.mxu0 %v2329_v2 }
 0x353   :  { %2161 = vmatpush3.bf16.msra.mxu0 %v2655_v40 }
 0x354   :  { %2162 = vmatprep.subr.bf16.mxu0 %v2329_v2 }
 0x357   :  { %2163 = vmatpush3.bf16.msra.mxu0 %v2664_v41 }
 0x358   :  { %2164 = vmatprep.subr.bf16.mxu0 %v2329_v2 }
 0x35b   :  { %2165 = vmatpush3.bf16.msra.mxu0 %v2671_v42 }
 0x35c   :  { %2166 = vmatprep.subr.bf16.mxu0 %v2329_v2 }
 0x35f   :  { %2167 = vmatpush3.bf16.msra.mxu0 %v2678_v44 }
 0x360   :  { %2168 = vmatprep.subr.bf16.mxu0 %v2329_v2 }
 0x363   :  { %2169 = vmatpush3.bf16.msra.mxu0 %v2685_v45 }
 0x364   :  { %v1341_v39 = vpop.f32.mrb[24].mxu1  ;;  %2170 = vmatprep.subr.bf16.mxu0 %v2329_v2 }
 0x365   :  { %v2156_v40 = vpop.f32.mrb[25].mxu1 }
 0x366   :  { %v1344_v31 = vpop.f32.mrb[26].mxu1 }
 0x367   :  { %2171 = vmatpush3.bf16.msra.mxu0 %v2692_v46  ;;  %v2157_v41 = vpop.f32.mrb[27].mxu1  ;;  %v2297_v46 = vld [vmem:[%s2988_s5 + $0xc0] sm:$0xff]  }
 0x368   :  { %2172 = vmatprep.subr.bf16.mxu0 %v2329_v2 }
 0x36b   :  { %2173 = vmatpush3.bf16.msra.mxu0 %v2699_v49  ;;  %v2298_v49 = vld [vmem:[%s2988_s5 + $0xc8] sm:$0xff]  }
 0x36c   :  { %2198 = vmatprep.subr.bf16.mxu0 %v2329_v2 }
 0x36e   :  { %2175 = vmatmul.mubr.bf16.vlgmr.msra.gmra.mrb[28].mxu0 %v1154_v11 }
 0x36f   :  { %2214 = vmatprep.mubr.msk.bf16.mxu0 %vm2330_vm1, %v2329_v2  ;;  %2199 = vmatpush3.bf16.msra.mxu0 %v2297_v46 }
 0x370   :  { %2200 = vmatprep.subr.bf16.mxu0 %v2329_v2 }
 0x373   :  { %2201 = vmatpush3.bf16.msra.mxu0 %v2298_v49 }
 0x374   :  { %2202 = vmatprep.subr.bf16.mxu0 %v2329_v2 }
 0x377   :  { %2203 = vmatpush3.bf16.msra.mxu0 %v2299_v37 }
 0x378   :  { %2204 = vmatprep.subr.bf16.mxu0 %v2329_v2 }
 0x37b   :  { %2205 = vmatpush3.bf16.msra.mxu0 %v2300_v35 }
 0x37c   :  { %2206 = vmatprep.subr.bf16.mxu0 %v2329_v2 }
 0x37f   :  { %2207 = vmatpush3.bf16.msra.mxu0 %v2301_v58 }
 0x380   :  { %2208 = vmatprep.subr.bf16.mxu0 %v2329_v2 }
 0x383   :  { %2209 = vmatpush3.bf16.msra.mxu0 %v2302_v59 }
 0x384   :  { %v1424_v42 = vpop.f32.mrb[28].mxu1  ;;  %2210 = vmatprep.subr.bf16.mxu0 %v2329_v2 }
 0x385   :  { %v2196_v44 = vpop.f32.mrb[29].mxu1 }
 0x386   :  { %v1427_v45 = vpop.f32.mrb[30].mxu1 }
 0x387   :  { %v2197_v33 = vpop.f32.mrb[31].mxu1  ;;  %2211 = vmatpush3.bf16.msra.mxu0 %v2303_v60 }
 0x388   :  { %2212 = vmatprep.subr.bf16.mxu0 %v2329_v2 }
 0x38b   :  { %2213 = vmatpush3.bf16.msra.mxu0 %v2304_v61 }
 0x421   :  { %v1300_v62 = vpop.f32.mrb[24].mxu0 }
 0x422   :  { %v1306_v63 = vadd.f32 %v1300_v62, %v2910_v38  ;;  %v2136_v0 = vpop.f32.mrb[25].mxu0 }
 0x423   :  { %v1303_v1 = vpop.f32.mrb[26].mxu0 }
 0x424   :  { %v2137_v3 = vpop.f32.mrb[27].mxu0 }
 0x441   :  { %v1381_v4 = vpop.f32.mrb[28].mxu0 }
 0x442   :  { %v1382_v5 = vadd.f32 %v1381_v4, %v1341_v39  ;;  %v2176_v6 = vpop.f32.mrb[29].mxu0 }
 0x443   :  { %v1384_v7 = vpop.f32.mrb[30].mxu0 }
 0x444   :  { %v1430_v11 = vadd.f32 %v1424_v42, %v1382_v5  ;;  %v2177_v20 = vpop.f32.mrb[31].mxu0 }
 0x446   :  { %v1431_v22 = vadd.f32 %v2775_v26, %v1430_v11 }
 0x448   :  { %vm1432_vm13 = vcmp.ge.f32.partialorder %v1431_v22, 0.0  ;;  %v1433_v2 = vmul.f32 0.01, %v1431_v22 }
 0x44a   :  { %v1434_v28 = vsel %vm1432_vm13, %v1431_v22, %v1433_v2 }
 0x44b   :  { %v1435_v32 = vpack.c.bf16 %v1434_v28, %v1434_v28 }
 0x44d   :  { %2215 = vmatmul.mubr.bf16.vlgmr.msra.gmra.mrb[32].mxu0 %v1435_v32 }
 0x520   :  { %v1534_v36 = vpop.f32.mrb[32].mxu0 }
 0x521   :  { %v1540_v47 = vadd.f32 %v1534_v36, %v1306_v63  ;;  %v2216_v48 = vpop.f32.mrb[33].mxu0 }
 0x522   :  { %v1537_v50 = vpop.f32.mrb[34].mxu0 }
 0x523   :  { %v2217_v51 = vpop.f32.mrb[35].mxu0  ;;  %v1548_v52 = vadd.f32 %v1710_v43, %v1540_v47 }
 0x525   :  { %1549 = vst [vmem:[#allocation2] sm:$0xff] %v1548_v52 }
 0x526   :  { %2316 = shalt.err (!%p2313_p4)
}
 0x527   :  { %s2317_s6 = scalar_lea.hbm %s2990_s7, 128 }
 0x528   :  { %p2318_p5 = scmp.ne.s32.totalorder %s2990_s7, %s2317_s6  ;;  %p2321_p6 = scmp.lt.u32.totalorder %s2317_s6, %s2990_s7 }
 0x52a   :  { %p2323_p7 = pnand %p2321_p6, %p2318_p5 }
 0x52c   :  { %2326 = shalt.err (!%p2323_p7)
}
 0x52d   :  { %1559 = dma.vmem_to_hbm [thread:$0]  %s1557_s22, 128, %s2990_s7, [#allocation3]  }
 0x52e   :  { %2327 = dma.done.wait [#allocation3], 128  }
 0x52f   :  { %2328 = vsyncadd [#allocation3], 4294967168 }
 0x530   :  { %1563 = vsyncpa [#allocation3], 1 }

// kernel: fwd.1
= control target key start
LH: loop header
LB: loop body
LE: loop exit
PB: predicated region body
PF: predicated region fallthrough
CT: control target
= control target key end

     0   :  { %v2329_v2 = vmov 0.0   ;;  %vm94_vm0 = vcmask 523264   ;;  %s2983_s0 = inlined_call_operand.vmem [shape: f32[18,8,64], index: 0, kind: input, shape index: {}]   ;;  %s2984_s1 = inlined_call_operand.vmem [shape: bf16[3,64,128], index: 1, kind: input, shape index: {}]   ;;  %s2985_s2 = inlined_call_operand.vmem [shape: f32[1,128], index: 2, kind: input, shape index: {}]   ;;  %s2986_s3 = inlined_call_operand.vmem [shape: bf16[3,128,128], index: 3, kind: input, shape index: {}]   ;;  %s2987_s4 = inlined_call_operand.vmem [shape: f32[1,128], index: 4, kind: input, shape index: {}]   ;;  %s2988_s5 = inlined_call_operand.vmem [shape: bf16[512,128], index: 5, kind: input, shape index: {}]   ;;  %s2989_s6 = inlined_call_operand.vmem [shape: f32[1,128], index: 6, kind: input, shape index: {}]   ;;  %s2990_s7 = inlined_call_operand.hbm [shape: f32[8,128], index: 7, kind: output, shape index: {}]  }
   0x1   :  { %v2237_v0 = vld [vmem:[%s2984_s1 + $0x20] sm:$0xff]   ;;  %v2238_v1 = vld [vmem:[%s2984_s1 + $0x28] sm:$0xff]   ;;  %1918 = vmatprep.subr.bf16.mxu1 %v2329_v2  ;;  %v2239_v3 = vld [vmem:[%s2984_s1 + $0x30] sm:$0xff]  }
   0x2   :  { %1870 = vmatprep.subr.bf16.mxu0 %v2237_v0  ;;  %v1564_v4 = vld [vmem:[%s2983_s0 + $0x48] sm:$0xff]  ;;  %v1565_v5 = vld [vmem:[%s2983_s0 + $0x50] sm:$0xff]  ;;  %v2240_v7 = vld [vmem:[%s2984_s1 + $0x38] sm:$0xff]  }
   0x3   :  { %1871 = vmatpush3.bf16.msra.mxu0 %v2237_v0  ;;  %v57_v6 = vpack.c.bf16 %v1565_v5, %v1564_v4  ;;  %v1566_v8 = vld [vmem:[%s2983_s0 + $0x58] sm:$0xff]  ;;  %v1567_v9 = vld [vmem:[%s2983_s0 + $0x60] sm:$0xff]  ;;  %v1568_v11 = vld [vmem:[%s2983_s0 + $0x68] sm:$0xff] }
   0x4   :  { %1872 = vmatprep.subr.bf16.mxu0 %v2238_v1  ;;  %v2241_v10 = vld [vmem:[%s2984_s1] sm:$0xff]   ;;  %v1569_v12 = vld [vmem:[%s2983_s0 + $0x70] sm:$0xff]  ;;  %v58_v13 = vpack.c.bf16 %v1567_v9, %v1566_v8  ;;  %v2242_v15 = vld [vmem:[%s2984_s1 + $0x8] sm:$0xff]  }
   0x5   :  { %1878 = vmatprep.mubr.msk.bf16.mxu0 %vm94_vm0, %v57_v6  ;;  %v59_v14 = vpack.c.bf16 %v1569_v12, %v1568_v11  ;;  %v1570_v16 = vld [vmem:[%s2983_s0 + $0x78] sm:$0xff]  ;;  %v1571_v17 = vld [vmem:[%s2983_s0 + $0x80] sm:$0xff]  ;;  %v2243_v18 = vld [vmem:[%s2984_s1 + $0x10] sm:$0xff]  }
   0x6   :  { %v28_v19 = vld [vmem:[%s2983_s0] sm:$0xff]  ;;  %v29_v21 = vld [vmem:[%s2983_s0 + $0x8] sm:$0xff]  ;;  %v60_v23 = vpack.c.bf16 %v1571_v17, %v1570_v16  ;;  %v2244_v25 = vld [vmem:[%s2984_s1 + $0x18] sm:$0xff]  }
   0x7   :  { %1873 = vmatpush3.bf16.msra.mxu0 %v2238_v1  ;;  %v2427_v20 = vld [vmem:[%s2986_s3 + $0x80] sm:$0xff]   ;;  %v2436_v22 = vld [vmem:[%s2986_s3 + $0x88] sm:$0xff]   ;;  %v36_v24 = vpack.c.bf16 %v29_v21, %v28_v19  ;;  %v30_v26 = vld [vmem:[%s2983_s0 + $0x10] sm:$0xff] }
   0x8   :  { %1874 = vmatprep.subr.bf16.mxu0 %v2239_v3  ;;  %1919 = vmatpush3.bf16.msra.mxu1 %v2427_v20  ;;  %v31_v27 = vld [vmem:[%s2983_s0 + $0x18] sm:$0xff]  ;;  %v2452_v28 = vld [vmem:[%s2986_s3 + $0x90] sm:$0xff]   ;;  %v2245_v29 = vld [vmem:[%s2984_s1 + $0x40] sm:$0xff]   ;;  %v282_v42 = vpack.c.bf16 %v30_v26, %v29_v21 }
   0x9   :  { %1920 = vmatprep.subr.bf16.mxu1 %v2329_v2  ;;  %v32_v30 = vld [vmem:[%s2983_s0 + $0x20] sm:$0xff]  ;;  %v33_v31 = vld [vmem:[%s2983_s0 + $0x28] sm:$0xff]  ;;  %v2469_v32 = vld [vmem:[%s2986_s3 + $0x98] sm:$0xff]   ;;  %v37_v33 = vpack.c.bf16 %v31_v27, %v30_v26 }
   0xa   :  { %v2246_v34 = vld [vmem:[%s2984_s1 + $0x48] sm:$0xff]   ;;  %v38_v35 = vpack.c.bf16 %v33_v31, %v32_v30  ;;  %v2479_v36 = vld [vmem:[%s2986_s3 + $0xa0] sm:$0xff]   ;;  %v34_v37 = vld [vmem:[%s2983_s0 + $0x30] sm:$0xff]  ;;  %v283_v44 = vpack.c.bf16 %v32_v30, %v31_v27 }
   0xb   :  { %1875 = vmatpush3.bf16.msra.mxu0 %v2239_v3  ;;  %v35_v38 = vld [vmem:[%s2983_s0 + $0x38] sm:$0xff]  ;;  %v2247_v39 = vld [vmem:[%s2984_s1 + $0x50] sm:$0xff]   ;;  %v2504_v43 = vld [vmem:[%s2986_s3 + $0x40] sm:$0xff]   ;;  %v284_v45 = vpack.c.bf16 %v34_v37, %v33_v31 }
   0xc   :  { %1876 = vmatprep.subr.bf16.mxu0 %v2240_v7  ;;  %1921 = vmatpush3.bf16.msra.mxu1 %v2436_v22  ;;  %v39_v40 = vpack.c.bf16 %v35_v38, %v34_v37  ;;  %v2248_v41 = vld [vmem:[%s2984_s1 + $0x58] sm:$0xff]   ;;  %v1603_v46 = vld [vmem:[%s2983_s0 + $0x40] sm:$0xff]  ;;  %v2513_v47 = vld [vmem:[%s2986_s3 + $0x48] sm:$0xff]  }
   0xd   :  { %1922 = vmatprep.subr.bf16.mxu1 %v2329_v2  ;;  %v2522_v48 = vld [vmem:[%s2986_s3 + $0x50] sm:$0xff]   ;;  %v285_v49 = vpack.c.bf16 %v1603_v46, %v35_v38 }
   0xf   :  { %1877 = vmatpush3.bf16.msra.mxu0 %v2240_v7 }
  0x10   :  { %1886 = vmatprep.subr.bf16.mxu0 %v2241_v10  ;;  %1923 = vmatpush3.bf16.msra.mxu1 %v2452_v28 }
  0x11   :  { %1924 = vmatprep.subr.bf16.mxu1 %v2329_v2 }
  0x12   :  { %1879 = vmatmul.mubr.msk.bf16.vlgmr.msra.gmra.mrb[0].mxu0 %vm94_vm0, %v58_v13 }
  0x13   :  { %1887 = vmatpush3.bf16.msra.mxu0 %v2241_v10  ;;  %1882 = vmatprep.mubr.msk.bf16.mxu0 %vm94_vm0, %v59_v14 }
  0x14   :  { %1888 = vmatprep.subr.bf16.mxu0 %v2242_v15  ;;  %1925 = vmatpush3.bf16.msra.mxu1 %v2469_v32 }
  0x15   :  { %1926 = vmatprep.subr.bf16.mxu1 %v2329_v2 }
  0x17   :  { %1889 = vmatpush3.bf16.msra.mxu0 %v2242_v15 }
  0x18   :  { %1890 = vmatprep.subr.bf16.mxu0 %v2243_v18  ;;  %1927 = vmatpush3.bf16.msra.mxu1 %v2479_v36 }
  0x19   :  { %1928 = vmatprep.subr.bf16.mxu1 %v2329_v2 }
  0x1a   :  { %1883 = vmatmul.mubr.msk.bf16.gmra.mrb[4].mxu0 %vm94_vm0, %v60_v23 }
  0x1b   :  { %1891 = vmatpush3.bf16.msra.mxu0 %v2243_v18  ;;  %1894 = vmatprep.mubr.msk.bf16.mxu0 %vm94_vm0, %v36_v24 }
  0x1c   :  { %1892 = vmatprep.subr.bf16.mxu0 %v2244_v25 }
  0x1f   :  { %1893 = vmatpush3.bf16.msra.mxu0 %v2244_v25 }
  0x20   :  { %1902 = vmatprep.subr.bf16.mxu0 %v2245_v29 }
  0x22   :  { %1895 = vmatmul.mubr.msk.bf16.vlgmr.msra.gmra.mrb[0].mxu0 %vm94_vm0, %v37_v33 }
  0x23   :  { %1903 = vmatpush3.bf16.msra.mxu0 %v2245_v29  ;;  %1898 = vmatprep.mubr.msk.bf16.mxu0 %vm94_vm0, %v38_v35 }
  0x24   :  { %1904 = vmatprep.subr.bf16.mxu0 %v2246_v34 }
  0x27   :  { %1905 = vmatpush3.bf16.msra.mxu0 %v2246_v34 }
  0x28   :  { %1906 = vmatprep.subr.bf16.mxu0 %v2247_v39 }
  0x2a   :  { %1899 = vmatmul.mubr.msk.bf16.gmra.mrb[4].mxu0 %vm94_vm0, %v39_v40 }
  0x2b   :  { %1907 = vmatpush3.bf16.msra.mxu0 %v2247_v39  ;;  %1910 = vmatprep.mubr.msk.bf16.mxu0 %vm94_vm0, %v282_v42 }
  0x2c   :  { %1908 = vmatprep.subr.bf16.mxu0 %v2248_v41 }
  0x2f   :  { %1909 = vmatpush3.bf16.msra.mxu0 %v2248_v41 }
  0x30   :  { %1958 = vmatprep.subr.bf16.mxu0 %v2329_v2 }
  0x32   :  { %1911 = vmatmul.mubr.msk.bf16.vlgmr.msra.gmra.mrb[0].mxu0 %vm94_vm0, %v283_v44 }
  0x33   :  { %1914 = vmatprep.mubr.msk.bf16.mxu0 %vm94_vm0, %v284_v45  ;;  %1959 = vmatpush3.bf16.msra.mxu0 %v2504_v43 }
  0x34   :  { %1960 = vmatprep.subr.bf16.mxu0 %v2329_v2 }
  0x37   :  { %1961 = vmatpush3.bf16.msra.mxu0 %v2513_v47 }
  0x38   :  { %1962 = vmatprep.subr.bf16.mxu0 %v2329_v2 }
  0x3a   :  { %1915 = vmatmul.mubr.msk.bf16.gmra.mrb[4].mxu0 %vm94_vm0, %v285_v49 }
  0x3b   :  { %12 = vsyncpa [#allocation3], 0  ;;  %1963 = vmatpush3.bf16.msra.mxu0 %v2522_v48  ;;  %v2531_v50 = vld [vmem:[%s2986_s3 + $0x58] sm:$0xff]   ;;  %v2538_v51 = vld [vmem:[%s2986_s3 + $0x60] sm:$0xff]   ;;  %vm2330_vm1 = vmmov 0  }
  0x3c   :  { %1964 = vmatprep.subr.bf16.mxu0 %v2329_v2  ;;  %v2545_v52 = vld [vmem:[%s2986_s3 + $0x68] sm:$0xff]   ;;  %v2558_v54 = vld [vmem:[%s2986_s3 + $0x70] sm:$0xff]   ;;  %v2572_v56 = vld [vmem:[%s2986_s3 + $0x78] sm:$0xff]   ;;  %1974 = vmatprep.mubr.msk.bf16.mxu0 %vm2330_vm1, %v2329_v2 }
  0x3d   :  { %v2553_v53 = vld [vmem:[%s2986_s3 + $0xa8] sm:$0xff]   ;;  %v2566_v55 = vld [vmem:[%s2986_s3 + $0xb0] sm:$0xff]   ;;  %v2580_v57 = vld [vmem:[%s2986_s3 + $0xb8] sm:$0xff]   ;;  %1934 = vmatprep.mubr.msk.bf16.mxu1 %vm2330_vm1, %v2329_v2 }
  0x3e   :  { %1929 = vmatpush3.bf16.msra.mxu1 %v2553_v53  ;;  %v1620_v58 = vld [vmem:[%s2985_s2] ss:$0 sm:$0xff]  ;;  %v2655_v40 = vld [vmem:[%s2986_s3 + $0x8] sm:$0xff]   ;;  %v2664_v41 = vld [vmem:[%s2986_s3 + $0x10] sm:$0xff]   ;;  %s2331_s2 = smov [#allocation2]  }
  0x3f   :  { %1965 = vmatpush3.bf16.msra.mxu0 %v2531_v50  ;;  %1930 = vmatprep.subr.bf16.mxu1 %v2329_v2  ;;  %v2645_v39 = vld [vmem:[%s2986_s3] sm:$0xff]   ;;  %v2671_v42 = vld [vmem:[%s2986_s3 + $0x18] sm:$0xff]   ;;  %v2685_v45 = vld [vmem:[%s2986_s3 + $0x28] sm:$0xff]   ;;  %s1556_s22 = sshll.u32 %s2331_s2, 4  ;;  %s1557_s22 = int_to_ptr.vmem [resolvable:$true] %s1556_s22 }
  0x40   :  { %1966 = vmatprep.subr.bf16.mxu0 %v2329_v2  ;;  %v2678_v44 = vld [vmem:[%s2986_s3 + $0x20] sm:$0xff]   ;;  %v2692_v46 = vld [vmem:[%s2986_s3 + $0x30] sm:$0xff]   ;;  %v2699_v49 = vld [vmem:[%s2986_s3 + $0x38] sm:$0xff]   ;;  %s2305_s1 = scalar_lea.vmem %s1557_s22, 128  ;;  %p2310_p1 = scmp.lt.s32.totalorder %s1557_s22, %s1557_s22 }
  0x41   :  { %p2306_p0 = scmp.ne.s32.totalorder %s1557_s22, %s2305_s1  ;;  %p2311_p2 = scmp.lt.s32.totalorder %s2305_s1, %s2305_s1 }
  0x42   :  { %1931 = vmatpush3.bf16.msra.mxu1 %v2566_v55 }
  0x43   :  { %1967 = vmatpush3.bf16.msra.mxu0 %v2538_v51  ;;  %1932 = vmatprep.subr.bf16.mxu1 %v2329_v2  ;;  %p2312_p3 = por %p2311_p2, %p2310_p1 }
  0x44   :  { %1968 = vmatprep.subr.bf16.mxu0 %v2329_v2 }
  0x45   :  { %p2313_p4 = pnand %p2312_p3, %p2306_p0 }
  0x46   :  { %1933 = vmatpush3.bf16.msra.mxu1 %v2580_v57 }
  0x47   :  { %1969 = vmatpush3.bf16.msra.mxu0 %v2545_v52  ;;  %1938 = vmatprep.subr.bf16.mxu1 %v2329_v2 }
  0x48   :  { %1970 = vmatprep.subr.bf16.mxu0 %v2329_v2 }
  0x4b   :  { %1971 = vmatpush3.bf16.msra.mxu0 %v2558_v54 }
  0x4c   :  { %1972 = vmatprep.subr.bf16.mxu0 %v2329_v2 }
  0x4f   :  { %1973 = vmatpush3.bf16.msra.mxu0 %v2572_v56 }
  0x50   :  { %1998 = vmatprep.subr.bf16.mxu0 %v2329_v2 }
 0x105   :  { %v1912_v59 = vpop.f32.mrb[0].mxu0 }
 0x106   :  { %v413_v60 = vadd.f32 %v1912_v59, %v1620_v58  ;;  %v365_v61 = vpop.f32.mrb[1].mxu0  ;;  %v2274_v59 = vld [vmem:[%s2988_s5 + $0x8] sm:$0xff]  }
 0x107   :  { %v411_v62 = vadd.f32 %v1620_v58, %v365_v61  ;;  %v1913_v63 = vpop.f32.mrb[2].mxu0  ;;  %v2276_v61 = vld [vmem:[%s2988_s5 + $0x18] sm:$0xff]  }
 0x108   :  { %v429_v0 = vmul.f32 0.01, %v413_v60  ;;  %v414_v1 = vadd.f32 %v1913_v63, %v1620_v58  ;;  %v368_v3 = vpop.f32.mrb[3].mxu0  ;;  %vm421_vm2 = vcmp.ge.f32.partialorder %v413_v60, 0.0  ;;  %v2278_v63 = vld [vmem:[%s2988_s5 + $0x28] sm:$0xff]  }
 0x109   :  { %v427_v4 = vmul.f32 0.01, %v411_v62  ;;  %v412_v5 = vadd.f32 %v1620_v58, %v368_v3  ;;  %vm419_vm3 = vcmp.ge.f32.partialorder %v411_v62, 0.0  ;;  %v2281_v3 = vld [vmem:[%s2988_s5 + $0x40] sm:$0xff]  }
 0x10a   :  { %vm422_vm4 = vcmp.ge.f32.partialorder %v414_v1, 0.0  ;;  %v430_v6 = vmul.f32 0.01, %v414_v1  ;;  %v437_v8 = vsel %vm421_vm2, %v413_v60, %v429_v0  ;;  %v2275_v60 = vld [vmem:[%s2988_s5 + $0x10] sm:$0xff]  }
 0x10b   :  { %vm420_vm5 = vcmp.ge.f32.partialorder %v412_v5, 0.0  ;;  %v428_v7 = vmul.f32 0.01, %v412_v5  ;;  %v435_v10 = vsel %vm419_vm3, %v411_v62, %v427_v4  ;;  %v2277_v62 = vld [vmem:[%s2988_s5 + $0x20] sm:$0xff]   ;;  %v2279_v0 = vld [vmem:[%s2988_s5 + $0x30] sm:$0xff]   ;;  %v2282_v4 = vld [vmem:[%s2988_s5 + $0x48] sm:$0xff]  }
 0x10c   :  { %v438_v9 = vsel %vm422_vm4, %v414_v1, %v430_v6  ;;  %v2280_v1 = vld [vmem:[%s2988_s5 + $0x38] sm:$0xff]  }
 0x10d   :  { %v2592_v11 = vpack.c.bf16 %v438_v9, %v437_v8  ;;  %v436_v12 = vsel %vm420_vm5, %v412_v5, %v428_v7  ;;  %v1916_v13 = vpop.f32.mrb[4].mxu0  ;;  %v2283_v5 = vld [vmem:[%s2988_s5 + $0x50] sm:$0xff]   ;;  %v2284_v6 = vld [vmem:[%s2988_s5 + $0x58] sm:$0xff]   ;;  %v2285_v7 = vld [vmem:[%s2988_s5 + $0x60] sm:$0xff]  }
 0x10e   :  { %v417_v14 = vadd.f32 %v1916_v13, %v1620_v58  ;;  %v381_v15 = vpop.f32.mrb[5].mxu0  ;;  %v2594_v16 = vpack.c.bf16 %v436_v12, %v435_v10  ;;  %v2286_v8 = vld [vmem:[%s2988_s5 + $0x68] sm:$0xff]   ;;  %v2287_v9 = vld [vmem:[%s2988_s5 + $0x70] sm:$0xff]   ;;  %v2288_v10 = vld [vmem:[%s2988_s5 + $0x78] sm:$0xff]  }
 0x10f   :  { %v415_v17 = vadd.f32 %v1620_v58, %v381_v15  ;;  %v1917_v18 = vpop.f32.mrb[6].mxu0  ;;  %1975 = vmatmul.mubr.bf16.vlgmr.msra.gmra.mrb[8].mxu0 %v2592_v11  ;;  %v833_v38 = vrot.slane %v2592_v11, 4 }
 0x110   :  { %v433_v19 = vmul.f32 0.01, %v417_v14  ;;  %v418_v21 = vadd.f32 %v1917_v18, %v1620_v58  ;;  %1999 = vmatpush3.bf16.msra.mxu0 %v2427_v20  ;;  %v384_v23 = vpop.f32.mrb[7].mxu0  ;;  %v498_v24 = vrot.slane %v2594_v16, 4  ;;  %2014 = vmatprep.mubr.msk.bf16.mxu0 %vm2330_vm1, %v2329_v2  ;;  %vm425_vm6 = vcmp.ge.f32.partialorder %v417_v14, 0.0 }
 0x111   :  { %v431_v25 = vmul.f32 0.01, %v415_v17  ;;  %v416_v26 = vadd.f32 %v1620_v58, %v384_v23  ;;  %2000 = vmatprep.subr.bf16.mxu0 %v2329_v2  ;;  %vm423_vm7 = vcmp.ge.f32.partialorder %v415_v17, 0.0  ;;  %v2273_v58 = vld [vmem:[%s2988_s5] sm:$0xff]  }
 0x112   :  { %vm426_vm8 = vcmp.ge.f32.partialorder %v418_v21, 0.0  ;;  %v434_v27 = vmul.f32 0.01, %v418_v21  ;;  %1935 = vmatmul.mubr.bf16.vlgmr.msra.gmra.mrb[0].mxu1 %v498_v24  ;;  %v441_v30 = vsel %vm425_vm6, %v417_v14, %v433_v19 }
 0x113   :  { %vm424_vm9 = vcmp.ge.f32.partialorder %v416_v26, 0.0  ;;  %v432_v29 = vmul.f32 0.01, %v416_v26  ;;  %1939 = vmatpush3.bf16.msra.mxu1 %v2504_v43  ;;  %1954 = vmatprep.mubr.msk.bf16.mxu1 %vm2330_vm1, %v2329_v2  ;;  %v439_v33 = vsel %vm423_vm7, %v415_v17, %v431_v25 }
 0x114   :  { %v442_v31 = vsel %vm426_vm8, %v418_v21, %v434_v27  ;;  %2001 = vmatpush3.bf16.msra.mxu0 %v2436_v22  ;;  %1940 = vmatprep.subr.bf16.mxu1 %v2329_v2 }
 0x115   :  { %v2609_v34 = vpack.c.bf16 %v442_v31, %v441_v30  ;;  %v440_v35 = vsel %vm424_vm9, %v416_v26, %v432_v29  ;;  %2002 = vmatprep.subr.bf16.mxu0 %v2329_v2  ;;  %v2775_v26 = vld [vmem:[%s2987_s4] ss:$0 sm:$0xff] }
 0x116   :  { %v2612_v37 = vpack.c.bf16 %v440_v35, %v439_v33 }
 0x117   :  { %1941 = vmatpush3.bf16.msra.mxu1 %v2513_v47 }
 0x118   :  { %2003 = vmatpush3.bf16.msra.mxu0 %v2452_v28  ;;  %1942 = vmatprep.subr.bf16.mxu1 %v2329_v2  ;;  %v1154_v11 = vrot.slane %v2612_v37, 4 }
 0x119   :  { %2004 = vmatprep.subr.bf16.mxu0 %v2329_v2 }
 0x11b   :  { %1943 = vmatpush3.bf16.msra.mxu1 %v2522_v48 }
 0x11c   :  { %2005 = vmatpush3.bf16.msra.mxu0 %v2469_v32  ;;  %1944 = vmatprep.subr.bf16.mxu1 %v2329_v2 }
 0x11d   :  { %2006 = vmatprep.subr.bf16.mxu0 %v2329_v2 }
 0x11f   :  { %1945 = vmatpush3.bf16.msra.mxu1 %v2531_v50 }
 0x120   :  { %2007 = vmatpush3.bf16.msra.mxu0 %v2479_v36  ;;  %1946 = vmatprep.subr.bf16.mxu1 %v2329_v2 }
 0x121   :  { %2008 = vmatprep.subr.bf16.mxu0 %v2329_v2 }
 0x123   :  { %1947 = vmatpush3.bf16.msra.mxu1 %v2538_v51 }
 0x124   :  { %2009 = vmatpush3.bf16.msra.mxu0 %v2553_v53  ;;  %1948 = vmatprep.subr.bf16.mxu1 %v2329_v2 }
 0x125   :  { %2010 = vmatprep.subr.bf16.mxu0 %v2329_v2 }
 0x127   :  { %1949 = vmatpush3.bf16.msra.mxu1 %v2545_v52 }
 0x128   :  { %2011 = vmatpush3.bf16.msra.mxu0 %v2566_v55  ;;  %1950 = vmatprep.subr.bf16.mxu1 %v2329_v2 }
 0x129   :  { %2012 = vmatprep.subr.bf16.mxu0 %v2329_v2 }
 0x12b   :  { %1951 = vmatpush3.bf16.msra.mxu1 %v2558_v54 }
 0x12c   :  { %2013 = vmatpush3.bf16.msra.mxu0 %v2580_v57  ;;  %1952 = vmatprep.subr.bf16.mxu1 %v2329_v2 }
 0x12d   :  { %2038 = vmatprep.subr.bf16.mxu0 %v2329_v2 }
 0x12f   :  { %1953 = vmatpush3.bf16.msra.mxu1 %v2572_v56  ;;  %2015 = vmatmul.mubr.bf16.vlgmr.msra.gmra.mrb[12].mxu0 %v833_v38 }
 0x130   :  { %1978 = vmatprep.subr.bf16.mxu1 %v2329_v2  ;;  %2054 = vmatprep.mubr.msk.bf16.mxu0 %vm2330_vm1, %v2329_v2 }
 0x131   :  { %2039 = vmatpush3.bf16.msra.mxu0 %v2273_v58 }
 0x132   :  { %1955 = vmatmul.mubr.bf16.vlgmr.msra.gmra.mrb[4].mxu1 %v2594_v16  ;;  %2040 = vmatprep.subr.bf16.mxu0 %v2329_v2 }
 0x133   :  { %1979 = vmatpush3.bf16.msra.mxu1 %v2645_v39  ;;  %1994 = vmatprep.mubr.msk.bf16.mxu1 %vm2330_vm1, %v2329_v2 }
 0x134   :  { %1980 = vmatprep.subr.bf16.mxu1 %v2329_v2 }
 0x135   :  { %2041 = vmatpush3.bf16.msra.mxu0 %v2274_v59 }
 0x136   :  { %2042 = vmatprep.subr.bf16.mxu0 %v2329_v2 }
 0x137   :  { %1981 = vmatpush3.bf16.msra.mxu1 %v2655_v40 }
 0x138   :  { %1982 = vmatprep.subr.bf16.mxu1 %v2329_v2 }
 0x139   :  { %2043 = vmatpush3.bf16.msra.mxu0 %v2275_v60 }
 0x13a   :  { %2044 = vmatprep.subr.bf16.mxu0 %v2329_v2 }
 0x13b   :  { %1983 = vmatpush3.bf16.msra.mxu1 %v2664_v41 }
 0x13c   :  { %1984 = vmatprep.subr.bf16.mxu1 %v2329_v2 }
 0x13d   :  { %2045 = vmatpush3.bf16.msra.mxu0 %v2276_v61 }
 0x13e   :  { %2046 = vmatprep.subr.bf16.mxu0 %v2329_v2 }
 0x13f   :  { %1985 = vmatpush3.bf16.msra.mxu1 %v2671_v42 }
 0x140   :  { %1986 = vmatprep.subr.bf16.mxu1 %v2329_v2 }
 0x141   :  { %2047 = vmatpush3.bf16.msra.mxu0 %v2277_v62 }
 0x142   :  { %2048 = vmatprep.subr.bf16.mxu0 %v2329_v2 }
 0x143   :  { %1987 = vmatpush3.bf16.msra.mxu1 %v2678_v44 }
 0x144   :  { %1988 = vmatprep.subr.bf16.mxu1 %v2329_v2 }
 0x145   :  { %2049 = vmatpush3.bf16.msra.mxu0 %v2278_v63 }
 0x146   :  { %2050 = vmatprep.subr.bf16.mxu0 %v2329_v2 }
 0x147   :  { %1989 = vmatpush3.bf16.msra.mxu1 %v2685_v45 }
 0x148   :  { %1990 = vmatprep.subr.bf16.mxu1 %v2329_v2 }
 0x149   :  { %2051 = vmatpush3.bf16.msra.mxu0 %v2279_v0 }
 0x14a   :  { %2052 = vmatprep.subr.bf16.mxu0 %v2329_v2 }
 0x14b   :  { %1991 = vmatpush3.bf16.msra.mxu1 %v2692_v46 }
 0x14c   :  { %1992 = vmatprep.subr.bf16.mxu1 %v2329_v2 }
 0x14d   :  { %2053 = vmatpush3.bf16.msra.mxu0 %v2280_v1 }
 0x14e   :  { %2078 = vmatprep.subr.bf16.mxu0 %v2329_v2 }
 0x14f   :  { %1993 = vmatpush3.bf16.msra.mxu1 %v2699_v49 }
 0x150   :  { %2018 = vmatprep.subr.bf16.mxu1 %v2329_v2 }
 0x152   :  { %1995 = vmatmul.mubr.bf16.vlgmr.msra.gmra.mrb[8].mxu1 %v498_v24 }
 0x153   :  { %2034 = vmatprep.mubr.msk.bf16.mxu1 %vm2330_vm1, %v2329_v2  ;;  %2019 = vmatpush3.bf16.msra.mxu1 %v2281_v3 }
 0x154   :  { %2020 = vmatprep.subr.bf16.mxu1 %v2329_v2 }
 0x157   :  { %2021 = vmatpush3.bf16.msra.mxu1 %v2282_v4 }
 0x158   :  { %2022 = vmatprep.subr.bf16.mxu1 %v2329_v2 }
 0x15b   :  { %2023 = vmatpush3.bf16.msra.mxu1 %v2283_v5 }
 0x15c   :  { %2024 = vmatprep.subr.bf16.mxu1 %v2329_v2 }
 0x15f   :  { %2025 = vmatpush3.bf16.msra.mxu1 %v2284_v6 }
 0x160   :  { %2026 = vmatprep.subr.bf16.mxu1 %v2329_v2 }
 0x163   :  { %2027 = vmatpush3.bf16.msra.mxu1 %v2285_v7 }
 0x164   :  { %2028 = vmatprep.subr.bf16.mxu1 %v2329_v2 }
 0x167   :  { %2029 = vmatpush3.bf16.msra.mxu1 %v2286_v8 }
 0x168   :  { %2030 = vmatprep.subr.bf16.mxu1 %v2329_v2 }
 0x16b   :  { %2031 = vmatpush3.bf16.msra.mxu1 %v2287_v9 }
 0x16c   :  { %2032 = vmatprep.subr.bf16.mxu1 %v2329_v2 }
 0x16f   :  { %2033 = vmatpush3.bf16.msra.mxu1 %v2288_v10 }
 0x170   :  { %2058 = vmatprep.subr.bf16.mxu1 %v2329_v2 }
 0x1e2   :  { %v738_v12 = vpop.f32.mrb[8].mxu0 }
 0x1e3   :  { %v1976_v13 = vpop.f32.mrb[9].mxu0 }
 0x1e4   :  { %v741_v14 = vpop.f32.mrb[10].mxu0 }
 0x1e5   :  { %v582_v15 = vpop.f32.mrb[0].mxu1  ;;  %v1977_v16 = vpop.f32.mrb[11].mxu0 }
 0x1e6   :  { %v1936_v17 = vpop.f32.mrb[1].mxu1 }
 0x1e7   :  { %v585_v18 = vpop.f32.mrb[2].mxu1 }
 0x1e8   :  { %v1937_v19 = vpop.f32.mrb[3].mxu1 }
 0x202   :  { %v869_v21 = vpop.f32.mrb[12].mxu0 }
 0x203   :  { %v2016_v23 = vpop.f32.mrb[13].mxu0 }
 0x204   :  { %v872_v24 = vpop.f32.mrb[14].mxu0 }
 0x205   :  { %v670_v25 = vpop.f32.mrb[4].mxu1  ;;  %v2017_v27 = vpop.f32.mrb[15].mxu0 }
 0x206   :  { %v671_v29 = vadd.f32 %v670_v25, %v582_v15  ;;  %v1956_v30 = vpop.f32.mrb[5].mxu1 }
 0x207   :  { %v673_v31 = vpop.f32.mrb[6].mxu1 }
 0x208   :  { %v683_v33 = vadd.f32 %v2775_v26, %v671_v29  ;;  %v1957_v35 = vpop.f32.mrb[7].mxu1 }
 0x209   :  { %v2300_v35 = vld [vmem:[%s2988_s5 + $0xd8] sm:$0xff]  }
 0x20a   :  { %vm684_vm10 = vcmp.ge.f32.partialorder %v683_v33, 0.0  ;;  %v685_v58 = vmul.f32 0.01, %v683_v33 }
 0x20c   :  { %v686_v59 = vsel %vm684_vm10, %v683_v33, %v685_v58  ;;  %v2301_v58 = vld [vmem:[%s2988_s5 + $0xe0] sm:$0xff]  }
 0x20d   :  { %v687_v60 = vpack.c.bf16 %v686_v59, %v686_v59  ;;  %v2302_v59 = vld [vmem:[%s2988_s5 + $0xe8] sm:$0xff]  }
 0x20f   :  { %2055 = vmatmul.mubr.bf16.vlgmr.msra.gmra.mrb[16].mxu0 %v687_v60  ;;  %v2303_v60 = vld [vmem:[%s2988_s5 + $0xf0] sm:$0xff]  }
 0x210   :  { %2079 = vmatpush3.bf16.msra.mxu0 %v2645_v39  ;;  %2094 = vmatprep.mubr.msk.bf16.mxu0 %vm2330_vm1, %v2329_v2 }
 0x211   :  { %2080 = vmatprep.subr.bf16.mxu0 %v2329_v2 }
 0x214   :  { %2081 = vmatpush3.bf16.msra.mxu0 %v2655_v40 }
 0x215   :  { %2082 = vmatprep.subr.bf16.mxu0 %v2329_v2 }
 0x218   :  { %2083 = vmatpush3.bf16.msra.mxu0 %v2664_v41 }
 0x219   :  { %2084 = vmatprep.subr.bf16.mxu0 %v2329_v2 }
 0x21c   :  { %2085 = vmatpush3.bf16.msra.mxu0 %v2671_v42 }
 0x21d   :  { %2086 = vmatprep.subr.bf16.mxu0 %v2329_v2 }
 0x220   :  { %2087 = vmatpush3.bf16.msra.mxu0 %v2678_v44 }
 0x221   :  { %2088 = vmatprep.subr.bf16.mxu0 %v2329_v2 }
 0x224   :  { %2089 = vmatpush3.bf16.msra.mxu0 %v2685_v45 }
 0x225   :  { %v826_v61 = vpop.f32.mrb[8].mxu1  ;;  %2090 = vmatprep.subr.bf16.mxu0 %v2329_v2 }
 0x226   :  { %v827_v62 = vadd.f32 %v826_v61, %v738_v12  ;;  %v1996_v63 = vpop.f32.mrb[9].mxu1  ;;  %v2304_v61 = vld [vmem:[%s2988_s5 + $0xf8] sm:$0xff]  }
 0x227   :  { %v829_v0 = vpop.f32.mrb[10].mxu1 }
 0x228   :  { %v875_v1 = vadd.f32 %v869_v21, %v827_v62  ;;  %2091 = vmatpush3.bf16.msra.mxu0 %v2692_v46  ;;  %v1997_v3 = vpop.f32.mrb[11].mxu1 }
 0x229   :  { %2092 = vmatprep.subr.bf16.mxu0 %v2329_v2 }
 0x22a   :  { %v876_v4 = vadd.f32 %v2775_v26, %v875_v1 }
 0x22c   :  { %vm877_vm11 = vcmp.ge.f32.partialorder %v876_v4, 0.0  ;;  %v878_v5 = vmul.f32 0.01, %v876_v4  ;;  %2093 = vmatpush3.bf16.msra.mxu0 %v2699_v49 }
 0x22d   :  { %2118 = vmatprep.subr.bf16.mxu0 %v2329_v2 }
 0x22e   :  { %v879_v6 = vsel %vm877_vm11, %v876_v4, %v878_v5 }
 0x22f   :  { %2095 = vmatmul.mubr.bf16.vlgmr.msra.gmra.mrb[20].mxu0 %v833_v38  ;;  %v880_v7 = vpack.c.bf16 %v879_v6, %v879_v6 }
 0x230   :  { %2134 = vmatprep.mubr.msk.bf16.mxu0 %vm2330_vm1, %v2329_v2 }
 0x231   :  { %2035 = vmatmul.mubr.bf16.vlgmr.msra.gmra.mrb[12].mxu1 %v880_v7 }
 0x232   :  { %2059 = vmatpush3.bf16.msra.mxu1 %v2504_v43  ;;  %2074 = vmatprep.mubr.msk.bf16.mxu1 %vm2330_vm1, %v2329_v2 }
 0x233   :  { %2060 = vmatprep.subr.bf16.mxu1 %v2329_v2 }
 0x236   :  { %2061 = vmatpush3.bf16.msra.mxu1 %v2513_v47 }
 0x237   :  { %2062 = vmatprep.subr.bf16.mxu1 %v2329_v2 }
 0x23a   :  { %2063 = vmatpush3.bf16.msra.mxu1 %v2522_v48 }
 0x23b   :  { %2064 = vmatprep.subr.bf16.mxu1 %v2329_v2 }
 0x23e   :  { %2065 = vmatpush3.bf16.msra.mxu1 %v2531_v50 }
 0x23f   :  { %2066 = vmatprep.subr.bf16.mxu1 %v2329_v2 }
 0x242   :  { %2067 = vmatpush3.bf16.msra.mxu1 %v2538_v51 }
 0x243   :  { %2068 = vmatprep.subr.bf16.mxu1 %v2329_v2 }
 0x246   :  { %2069 = vmatpush3.bf16.msra.mxu1 %v2545_v52 }
 0x247   :  { %2070 = vmatprep.subr.bf16.mxu1 %v2329_v2 }
 0x24a   :  { %2071 = vmatpush3.bf16.msra.mxu1 %v2558_v54 }
 0x24b   :  { %2072 = vmatprep.subr.bf16.mxu1 %v2329_v2 }
 0x24e   :  { %2073 = vmatpush3.bf16.msra.mxu1 %v2572_v56 }
 0x24f   :  { %2098 = vmatprep.subr.bf16.mxu1 %v2329_v2 }
 0x251   :  { %2075 = vmatmul.mubr.bf16.vlgmr.msra.gmra.mrb[16].mxu1 %v2612_v37  ;;  %v2299_v37 = vld [vmem:[%s2988_s5 + $0xd0] sm:$0xff]  }
 0x252   :  { %2099 = vmatpush3.bf16.msra.mxu1 %v2427_v20  ;;  %2114 = vmatprep.mubr.msk.bf16.mxu1 %vm2330_vm1, %v2329_v2 }
 0x253   :  { %2100 = vmatprep.subr.bf16.mxu1 %v2329_v2 }
 0x256   :  { %2101 = vmatpush3.bf16.msra.mxu1 %v2436_v22 }
 0x257   :  { %2102 = vmatprep.subr.bf16.mxu1 %v2329_v2 }
 0x25a   :  { %2103 = vmatpush3.bf16.msra.mxu1 %v2452_v28 }
 0x25b   :  { %2104 = vmatprep.subr.bf16.mxu1 %v2329_v2 }
 0x25e   :  { %2105 = vmatpush3.bf16.msra.mxu1 %v2469_v32 }
 0x25f   :  { %2106 = vmatprep.subr.bf16.mxu1 %v2329_v2 }
 0x262   :  { %2107 = vmatpush3.bf16.msra.mxu1 %v2479_v36 }
 0x263   :  { %2108 = vmatprep.subr.bf16.mxu1 %v2329_v2 }
 0x266   :  { %2109 = vmatpush3.bf16.msra.mxu1 %v2553_v53 }
 0x267   :  { %2110 = vmatprep.subr.bf16.mxu1 %v2329_v2 }
 0x26a   :  { %2111 = vmatpush3.bf16.msra.mxu1 %v2566_v55 }
 0x26b   :  { %2112 = vmatprep.subr.bf16.mxu1 %v2329_v2 }
 0x26e   :  { %2113 = vmatpush3.bf16.msra.mxu1 %v2580_v57 }
 0x26f   :  { %2138 = vmatprep.subr.bf16.mxu1 %v2329_v2 }
 0x271   :  { %2115 = vmatmul.mubr.bf16.vlgmr.msra.gmra.mrb[20].mxu1 %v1154_v11 }
 0x272   :  { %2139 = vmatpush3.bf16.msra.mxu1 %v2504_v43  ;;  %2154 = vmatprep.mubr.msk.bf16.mxu1 %vm2330_vm1, %v2329_v2  ;;  %v2293_v43 = vld [vmem:[%s2988_s5 + $0xa0] sm:$0xff]  }
 0x273   :  { %2140 = vmatprep.subr.bf16.mxu1 %v2329_v2 }
 0x276   :  { %2141 = vmatpush3.bf16.msra.mxu1 %v2513_v47  ;;  %v2294_v47 = vld [vmem:[%s2988_s5 + $0xa8] sm:$0xff]  }
 0x277   :  { %2142 = vmatprep.subr.bf16.mxu1 %v2329_v2 }
 0x27a   :  { %2143 = vmatpush3.bf16.msra.mxu1 %v2522_v48  ;;  %v2295_v48 = vld [vmem:[%s2988_s5 + $0xb0] sm:$0xff]  }
 0x27b   :  { %2144 = vmatprep.subr.bf16.mxu1 %v2329_v2 }
 0x27e   :  { %2145 = vmatpush3.bf16.msra.mxu1 %v2531_v50  ;;  %v2296_v50 = vld [vmem:[%s2988_s5 + $0xb8] sm:$0xff]  }
 0x27f   :  { %2146 = vmatprep.subr.bf16.mxu1 %v2329_v2 }
 0x282   :  { %2147 = vmatpush3.bf16.msra.mxu1 %v2538_v51 }
 0x283   :  { %2148 = vmatprep.subr.bf16.mxu1 %v2329_v2 }
 0x286   :  { %2149 = vmatpush3.bf16.msra.mxu1 %v2545_v52 }
 0x287   :  { %2150 = vmatprep.subr.bf16.mxu1 %v2329_v2 }
 0x28a   :  { %2151 = vmatpush3.bf16.msra.mxu1 %v2558_v54 }
 0x28b   :  { %2152 = vmatprep.subr.bf16.mxu1 %v2329_v2 }
 0x28e   :  { %2153 = vmatpush3.bf16.msra.mxu1 %v2572_v56 }
 0x28f   :  { %2178 = vmatprep.subr.bf16.mxu1 %v2329_v2 }
 0x291   :  { %2155 = vmatmul.mubr.bf16.vlgmr.msra.gmra.mrb[24].mxu1 %v2609_v34 }
 0x292   :  { %2179 = vmatpush3.bf16.msra.mxu1 %v2427_v20  ;;  %2194 = vmatprep.mubr.msk.bf16.mxu1 %vm2330_vm1, %v2329_v2  ;;  %v2289_v20 = vld [vmem:[%s2988_s5 + $0x80] sm:$0xff]  }
 0x293   :  { %2180 = vmatprep.subr.bf16.mxu1 %v2329_v2  ;;  %2119 = vmatpush3.bf16.msra.mxu0 %v2289_v20 }
 0x294   :  { %2120 = vmatprep.subr.bf16.mxu0 %v2329_v2 }
 0x296   :  { %2181 = vmatpush3.bf16.msra.mxu1 %v2436_v22  ;;  %v2290_v22 = vld [vmem:[%s2988_s5 + $0x88] sm:$0xff]  }
 0x297   :  { %2182 = vmatprep.subr.bf16.mxu1 %v2329_v2  ;;  %2121 = vmatpush3.bf16.msra.mxu0 %v2290_v22 }
 0x298   :  { %2122 = vmatprep.subr.bf16.mxu0 %v2329_v2 }
 0x29a   :  { %2183 = vmatpush3.bf16.msra.mxu1 %v2452_v28  ;;  %v2291_v28 = vld [vmem:[%s2988_s5 + $0x90] sm:$0xff]  }
 0x29b   :  { %2184 = vmatprep.subr.bf16.mxu1 %v2329_v2  ;;  %2123 = vmatpush3.bf16.msra.mxu0 %v2291_v28 }
 0x29c   :  { %2124 = vmatprep.subr.bf16.mxu0 %v2329_v2 }
 0x29e   :  { %2185 = vmatpush3.bf16.msra.mxu1 %v2469_v32  ;;  %v1388_v32 = vrot.slane %v2609_v34, 4 }
 0x29f   :  { %2186 = vmatprep.subr.bf16.mxu1 %v2329_v2 }
 0x2a2   :  { %2187 = vmatpush3.bf16.msra.mxu1 %v2479_v36  ;;  %v2292_v36 = vld [vmem:[%s2988_s5 + $0x98] sm:$0xff]  }
 0x2a3   :  { %2188 = vmatprep.subr.bf16.mxu1 %v2329_v2  ;;  %2125 = vmatpush3.bf16.msra.mxu0 %v2292_v36 }
 0x2a4   :  { %2126 = vmatprep.subr.bf16.mxu0 %v2329_v2 }
 0x2a6   :  { %2189 = vmatpush3.bf16.msra.mxu1 %v2553_v53 }
 0x2a7   :  { %2190 = vmatprep.subr.bf16.mxu1 %v2329_v2  ;;  %2127 = vmatpush3.bf16.msra.mxu0 %v2293_v43  ;;  %v1710_v43 = vld [vmem:[%s2989_s6] ss:$0 sm:$0xff] }
 0x2a8   :  { %2128 = vmatprep.subr.bf16.mxu0 %v2329_v2 }
 0x2aa   :  { %2191 = vmatpush3.bf16.msra.mxu1 %v2566_v55 }
 0x2ab   :  { %2192 = vmatprep.subr.bf16.mxu1 %v2329_v2  ;;  %2129 = vmatpush3.bf16.msra.mxu0 %v2294_v47 }
 0x2ac   :  { %2130 = vmatprep.subr.bf16.mxu0 %v2329_v2 }
 0x2ae   :  { %2193 = vmatpush3.bf16.msra.mxu1 %v2580_v57 }
 0x2af   :  { %2131 = vmatpush3.bf16.msra.mxu0 %v2295_v48 }
 0x2b0   :  { %2132 = vmatprep.subr.bf16.mxu0 %v2329_v2 }
 0x2b1   :  { %2195 = vmatmul.mubr.bf16.vlgmr.msra.gmra.mrb[28].mxu1 %v1388_v32 }
 0x2b3   :  { %2133 = vmatpush3.bf16.msra.mxu0 %v2296_v50 }
 0x2b4   :  { %2158 = vmatprep.subr.bf16.mxu0 %v2329_v2 }
 0x2e2   :  { %v1067_v51 = vpop.f32.mrb[16].mxu0 }
 0x2e3   :  { %v2056_v52 = vpop.f32.mrb[17].mxu0 }
 0x2e4   :  { %v1070_v53 = vpop.f32.mrb[18].mxu0 }
 0x2e5   :  { %v2057_v54 = vpop.f32.mrb[19].mxu0 }
 0x302   :  { %v1147_v55 = vpop.f32.mrb[20].mxu0 }
 0x303   :  { %v2096_v56 = vpop.f32.mrb[21].mxu0 }
 0x304   :  { %v1150_v57 = vpop.f32.mrb[22].mxu0  ;;  %v979_v34 = vpop.f32.mrb[12].mxu1 }
 0x305   :  { %v2910_v38 = vadd.f32 %v1067_v51, %v979_v34  ;;  %v2097_v8 = vpop.f32.mrb[23].mxu0  ;;  %v2036_v9 = vpop.f32.mrb[13].mxu1 }
 0x306   :  { %v982_v10 = vpop.f32.mrb[14].mxu1 }
 0x307   :  { %v2037_v12 = vpop.f32.mrb[15].mxu1 }
 0x324   :  { %v1107_v13 = vpop.f32.mrb[16].mxu1 }
 0x325   :  { %v1148_v14 = vadd.f32 %v1147_v55, %v1107_v13  ;;  %v2076_v15 = vpop.f32.mrb[17].mxu1 }
 0x326   :  { %v1110_v16 = vpop.f32.mrb[18].mxu1 }
 0x327   :  { %v2077_v17 = vpop.f32.mrb[19].mxu1 }
 0x344   :  { %v1190_v18 = vpop.f32.mrb[20].mxu1 }
 0x345   :  { %v1196_v19 = vadd.f32 %v1190_v18, %v1148_v14  ;;  %v2116_v21 = vpop.f32.mrb[21].mxu1 }
 0x346   :  { %v1193_v23 = vpop.f32.mrb[22].mxu1 }
 0x347   :  { %v1197_v24 = vadd.f32 %v2775_v26, %v1196_v19  ;;  %v2117_v25 = vpop.f32.mrb[23].mxu1 }
 0x349   :  { %vm1198_vm12 = vcmp.ge.f32.partialorder %v1197_v24, 0.0  ;;  %v1199_v27 = vmul.f32 0.01, %v1197_v24 }
 0x34b   :  { %v1200_v29 = vsel %vm1198_vm12, %v1197_v24, %v1199_v27 }
 0x34c   :  { %v1201_v30 = vpack.c.bf16 %v1200_v29, %v1200_v29 }
 0x34e   :  { %2135 = vmatmul.mubr.bf16.vlgmr.msra.gmra.mrb[24].mxu0 %v1201_v30 }
 0x34f   :  { %2159 = vmatpush3.bf16.msra.mxu0 %v2645_v39  ;;  %2174 = vmatprep.mubr.msk.bf16.mxu0 %vm2330_vm1, %v2329_v2 }
 0x350   :  { %2160 = vmatprep.subr.bf16.mxu0 %v2329_v2 }
 0x353   :  { %2161 = vmatpush3.bf16.msra.mxu0 %v2655_v40 }
 0x354   :  { %2162 = vmatprep.subr.bf16.mxu0 %v2329_v2 }
 0x357   :  { %2163 = vmatpush3.bf16.msra.mxu0 %v2664_v41 }
 0x358   :  { %2164 = vmatprep.subr.bf16.mxu0 %v2329_v2 }
 0x35b   :  { %2165 = vmatpush3.bf16.msra.mxu0 %v2671_v42 }
 0x35c   :  { %2166 = vmatprep.subr.bf16.mxu0 %v2329_v2 }
 0x35f   :  { %2167 = vmatpush3.bf16.msra.mxu0 %v2678_v44 }
 0x360   :  { %2168 = vmatprep.subr.bf16.mxu0 %v2329_v2 }
 0x363   :  { %2169 = vmatpush3.bf16.msra.mxu0 %v2685_v45 }
 0x364   :  { %v1341_v39 = vpop.f32.mrb[24].mxu1  ;;  %2170 = vmatprep.subr.bf16.mxu0 %v2329_v2 }
 0x365   :  { %v2156_v40 = vpop.f32.mrb[25].mxu1 }
 0x366   :  { %v1344_v31 = vpop.f32.mrb[26].mxu1 }
 0x367   :  { %2171 = vmatpush3.bf16.msra.mxu0 %v2692_v46  ;;  %v2157_v41 = vpop.f32.mrb[27].mxu1  ;;  %v2297_v46 = vld [vmem:[%s2988_s5 + $0xc0] sm:$0xff]  }
 0x368   :  { %2172 = vmatprep.subr.bf16.mxu0 %v2329_v2 }
 0x36b   :  { %2173 = vmatpush3.bf16.msra.mxu0 %v2699_v49  ;;  %v2298_v49 = vld [vmem:[%s2988_s5 + $0xc8] sm:$0xff]  }
 0x36c   :  { %2198 = vmatprep.subr.bf16.mxu0 %v2329_v2 }
 0x36e   :  { %2175 = vmatmul.mubr.bf16.vlgmr.msra.gmra.mrb[28].mxu0 %v1154_v11 }
 0x36f   :  { %2214 = vmatprep.mubr.msk.bf16.mxu0 %vm2330_vm1, %v2329_v2  ;;  %2199 = vmatpush3.bf16.msra.mxu0 %v2297_v46 }
 0x370   :  { %2200 = vmatprep.subr.bf16.mxu0 %v2329_v2 }
 0x373   :  { %2201 = vmatpush3.bf16.msra.mxu0 %v2298_v49 }
 0x374   :  { %2202 = vmatprep.subr.bf16.mxu0 %v2329_v2 }
 0x377   :  { %2203 = vmatpush3.bf16.msra.mxu0 %v2299_v37 }
 0x378   :  { %2204 = vmatprep.subr.bf16.mxu0 %v2329_v2 }
 0x37b   :  { %2205 = vmatpush3.bf16.msra.mxu0 %v2300_v35 }
 0x37c   :  { %2206 = vmatprep.subr.bf16.mxu0 %v2329_v2 }
 0x37f   :  { %2207 = vmatpush3.bf16.msra.mxu0 %v2301_v58 }
 0x380   :  { %2208 = vmatprep.subr.bf16.mxu0 %v2329_v2 }
 0x383   :  { %2209 = vmatpush3.bf16.msra.mxu0 %v2302_v59 }
 0x384   :  { %v1424_v42 = vpop.f32.mrb[28].mxu1  ;;  %2210 = vmatprep.subr.bf16.mxu0 %v2329_v2 }
 0x385   :  { %v2196_v44 = vpop.f32.mrb[29].mxu1 }
 0x386   :  { %v1427_v45 = vpop.f32.mrb[30].mxu1 }
 0x387   :  { %v2197_v33 = vpop.f32.mrb[31].mxu1  ;;  %2211 = vmatpush3.bf16.msra.mxu0 %v2303_v60 }
 0x388   :  { %2212 = vmatprep.subr.bf16.mxu0 %v2329_v2 }
 0x38b   :  { %2213 = vmatpush3.bf16.msra.mxu0 %v2304_v61 }
 0x421   :  { %v1300_v62 = vpop.f32.mrb[24].mxu0 }
 0x422   :  { %v1306_v63 = vadd.f32 %v1300_v62, %v2910_v38  ;;  %v2136_v0 = vpop.f32.mrb[25].mxu0 }
 0x423   :  { %v1303_v1 = vpop.f32.mrb[26].mxu0 }
 0x424   :  { %v2137_v3 = vpop.f32.mrb[27].mxu0 }
 0x441   :  { %v1381_v4 = vpop.f32.mrb[28].mxu0 }
 0x442   :  { %v1382_v5 = vadd.f32 %v1381_v4, %v1341_v39  ;;  %v2176_v6 = vpop.f32.mrb[29].mxu0 }
 0x443   :  { %v1384_v7 = vpop.f32.mrb[30].mxu0 }
 0x444   :  { %v1430_v11 = vadd.f32 %v1424_v42, %v1382_v5  ;;  %v2177_v20 = vpop.f32.mrb[31].mxu0 }
 0x446   :  { %v1431_v22 = vadd.f32 %v2775_v26, %v1430_v11 }
 0x448   :  { %vm1432_vm13 = vcmp.ge.f32.partialorder %v1431_v22, 0.0  ;;  %v1433_v2 = vmul.f32 0.01, %v1431_v22 }
 0x44a   :  { %v1434_v28 = vsel %vm1432_vm13, %v1431_v22, %v1433_v2 }
 0x44b   :  { %v1435_v32 = vpack.c.bf16 %v1434_v28, %v1434_v28 }
 0x44d   :  { %2215 = vmatmul.mubr.bf16.vlgmr.msra.gmra.mrb[32].mxu0 %v1435_v32 }
 0x520   :  { %v1534_v36 = vpop.f32.mrb[32].mxu0 }
 0x521   :  { %v1540_v47 = vadd.f32 %v1534_v36, %v1306_v63  ;;  %v2216_v48 = vpop.f32.mrb[33].mxu0 }
 0x522   :  { %v1537_v50 = vpop.f32.mrb[34].mxu0 }
 0x523   :  { %v2217_v51 = vpop.f32.mrb[35].mxu0  ;;  %v1548_v52 = vadd.f32 %v1710_v43, %v1540_v47 }
 0x525   :  { %1549 = vst [vmem:[#allocation2] sm:$0xff] %v1548_v52 }
 0x526   :  { %2316 = shalt.err (!%p2313_p4)
}
 0x527   :  { %s2317_s6 = scalar_lea.hbm %s2990_s7, 128 }
 0x528   :  { %p2318_p5 = scmp.ne.s32.totalorder %s2990_s7, %s2317_s6  ;;  %p2321_p6 = scmp.lt.u32.totalorder %s2317_s6, %s2990_s7 }
 0x52a   :  { %p2323_p7 = pnand %p2321_p6, %p2318_p5 }
 0x52c   :  { %2326 = shalt.err (!%p2323_p7)
}
 0x52d   :  { %1559 = dma.vmem_to_hbm [thread:$0]  %s1557_s22, 128, %s2990_s7, [#allocation3]  }
 0x52e   :  { %2327 = dma.done.wait [#allocation3], 128  }
 0x52f   :  { %2328 = vsyncadd [#allocation3], 4294967168 }
 0x530   :  { %1563 = vsyncpa [#allocation3], 1 }

</bundles_post_ra>
